<compile_context>
chip_gen: v5e
topology: v5e:2x2
jax: 0.10.0
libtpu: 0.0.40
codegen_flags: <defaults>
</compile_context>

<pallas_src>
import functools

import jax
import jax.numpy as jnp
from jax import lax
from jax.experimental import pallas as pl
from jax.experimental.pallas import tpu as pltpu


# ---------------------------------------------------------------------------
# helpers
# ---------------------------------------------------------------------------

def _gather_mat(n_out, n_in, stride, offset):
    """(n_out, n_in) 0/1 matrix G with G[o, i] = 1 iff i == o*stride + offset."""
    r = lax.broadcasted_iota(jnp.int32, (n_out, n_in), 0)
    c = lax.broadcasted_iota(jnp.int32, (n_out, n_in), 1)
    return (c == r * stride + offset).astype(jnp.float32)


def _shared_spec(a):
    """Whole-array block, same block for every grid step (weights / BN vectors)."""
    nd = a.ndim
    return pl.BlockSpec(a.shape, lambda i, _nd=nd: (0,) * _nd)


def _batch_spec(shape):
    """Per-batch-element block of a (N, d1, d2) array; batch dim squeezed in-kernel."""
    return pl.BlockSpec((None,) + tuple(shape[1:]), lambda i: (i, 0, 0))


_PARALLEL = pltpu.CompilerParams(dimension_semantics=("parallel",))


# ---------------------------------------------------------------------------
# kernels
# ---------------------------------------------------------------------------

def _stem_kernel(xp_ref, w_ref, sc_ref, sh_ref, o_ref):
    # Conv1d(1, 16, k=3, pad=1) with Cin=1: 3-tap VPU stencil (K=3 would waste the
    # MXU) + folded BN + ReLU.  xp_ref is the zero-padded (L+2, 1) per-sample tile.
    l = xp_ref.shape[0] - 2
    c1 = o_ref.shape[-1]
    acc = jnp.zeros((l, c1), jnp.float32)
    for k in range(3):
        acc = acc + xp_ref[pl.ds(k, l), :] * w_ref[k]          # (l,1)*(1,c1) on VPU
    y = acc * sc_ref[...] + sh_ref[...]
    o_ref[...] = jnp.maximum(y, 0.0).astype(o_ref.dtype)


def _block_kernel(xp_ref, w1_ref, sc1_ref, sh1_ref, w2_ref, sc2_ref, sh2_ref,
                  *rest, stride, fuse_head):
    # One full BasicBlock (optionally + avg-pool + fc head), all in VMEM.
    if fuse_head:
        fcw_ref, fcb_ref, o_ref = rest
    else:
        (o_ref,) = rest

    l_in = xp_ref.shape[0] - 2
    l_out = (l_in - 1) // stride + 1
    ctot = w1_ref.shape[-1]            # cout (+ cout again if 1x1 downsample fused)
    cout = w2_ref.shape[-1]
    has_ds = ctot > cout

    # --- conv1 (k=3, pad=1) [+ fused 1x1 downsample]: 3 shifted bf16 matmuls ----
    h = jnp.zeros((l_in, ctot), jnp.float32)
    for k in range(3):
        xk = xp_ref[pl.ds(k, l_in), :].astype(jnp.bfloat16)
        h = h + jnp.dot(xk, w1_ref[k], preferred_element_type=jnp.float32)
    if stride != 1:
        # pick rows 0, s, 2s, ... with a tiny 0/1 selection matmul (no strided load)
        h = jnp.dot(_gather_mat(l_out, l_in, stride, 0), h,
                    preferred_element_type=jnp.float32)
    h = h * sc1_ref[...] + sh1_ref[...]                        # folded BN (f32)
    a1 = jnp.maximum(h[:, :cout], 0.0)                         # conv1 branch
    if has_ds:
        res = h[:, cout:]                                      # BN'd downsample
    else:
        res = xp_ref[pl.ds(1, l_in), :]                        # identity residual

    # --- conv2 (k=3, stride=1, pad=1): 3 shifted matmuls; +/-1 halo via 0/1 mats --
    y = jnp.zeros((l_out, cout), jnp.float32)
    for k in range(3):
        if k == 1:
            xk = a1
        else:
            xk = jnp.dot(_gather_mat(l_out, l_out, 1, k - 1), a1,
                         preferred_element_type=jnp.float32)
        y = y + jnp.dot(xk.astype(jnp.bfloat16), w2_ref[k],
                        preferred_element_type=jnp.float32)
    out = jnp.maximum(y * sc2_ref[...] + sh2_ref[...] + res, 0.0)

    if fuse_head:
        # AdaptiveAvgPool1d(1) as a (1/L)*ones matmul (rides the MXU), then Linear.
        pooled = jnp.dot(jnp.full((1, l_out), 1.0 / l_out, jnp.float32), out,
                         preferred_element_type=jnp.float32)
        logits = jnp.dot(pooled, fcw_ref[...],
                         preferred_element_type=jnp.float32) + fcb_ref[...]
        o_ref[...] = logits.astype(o_ref.dtype)
    else:
        o_ref[...] = out.astype(o_ref.dtype)


# ---------------------------------------------------------------------------
# pallas_call wrappers (grid over batch, "parallel")
# ---------------------------------------------------------------------------

def _stem_call(x_nl1, sp):
    n, l, _ = x_nl1.shape
    c1 = sp["w"].shape[-1]
    xp = jnp.pad(x_nl1, ((0, 0), (1, 1), (0, 0)))
    return pl.pallas_call(
        _stem_kernel,
        grid=(n,),
        in_specs=[_batch_spec(xp.shape), _shared_spec(sp["w"]),
                  _shared_spec(sp["scale"]), _shared_spec(sp["shift"])],
        out_specs=_batch_spec((n, l, c1)),
        out_shape=jax.ShapeDtypeStruct((n, l, c1), jnp.float32),
        compiler_params=_PARALLEL,
    )(xp, sp["w"], sp["scale"], sp["shift"])


def _block_call(x_nlc, bp, head=None):
    n, l_in, _ = x_nlc.shape
    stride = bp["stride"]
    cout = bp["cout"]
    l_out = (l_in - 1) // stride + 1
    xp = jnp.pad(x_nlc, ((0, 0), (1, 1), (0, 0)))

    args = [xp, bp["w1"], bp["sc1"], bp["sh1"], bp["w2"], bp["sc2"], bp["sh2"]]
    in_specs = [_batch_spec(xp.shape)] + [_shared_spec(a) for a in args[1:]]
    if head is not None:
        args += [head["w"], head["b"]]
        in_specs += [_shared_spec(head["w"]), _shared_spec(head["b"])]
        nc = head["w"].shape[-1]
        out_shape = jax.ShapeDtypeStruct((n, 1, nc), jnp.float32)
    else:
        out_shape = jax.ShapeDtypeStruct((n, l_out, cout), jnp.float32)

    kernel = functools.partial(_block_kernel, stride=stride,
                               fuse_head=head is not None)
    return pl.pallas_call(
        kernel,
        grid=(n,),
        in_specs=in_specs,
        out_specs=_batch_spec(out_shape.shape),
        out_shape=out_shape,
        compiler_params=_PARALLEL,
    )(*args)


# ---------------------------------------------------------------------------
# parameters (PyTorch layout -> kernel layout, done once) and forward pass
# ---------------------------------------------------------------------------

def _bn_fold(bn, eps=1e-5):
    scale = bn["gamma"] / jnp.sqrt(bn["var"] + eps)
    shift = bn["beta"] - scale * bn["mean"]
    return scale, shift


def init_torch_params(key, layers=(1, 1, 1), num_classes=1):
    """Synthetic params in PyTorch layout (Conv1d: (Cout,Cin,K); Linear: (out,in))."""
    keys = iter(jax.random.split(key, 128))

    def conv_w(cout, cin, k):
        return 0.1 * jax.random.normal(next(keys), (cout, cin, k), jnp.float32)

    def bn_p(c):
        return {"gamma": 1.0 + 0.1 * jax.random.normal(next(keys), (c,), jnp.float32),
                "beta": 0.1 * jax.random.normal(next(keys), (c,), jnp.float32),
                "mean": jnp.zeros((c,), jnp.float32),   # fresh running stats
                "var": jnp.ones((c,), jnp.float32)}

    p = {"conv1_w": conv_w(16, 1, 3), "bn1": bn_p(16), "blocks": []}
    in_ch = 16
    for out_ch, stride, nb in ((16, 1, layers[0]), (32, 2, layers[1]),
                               (64, 2, layers[2])):
        s = stride
        for _ in range(nb):
            b = {"stride": s,
                 "conv1_w": conv_w(out_ch, in_ch, 3), "bn1": bn_p(out_ch),
                 "conv2_w": conv_w(out_ch, out_ch, 3), "bn2": bn_p(out_ch)}
            if s != 1 or in_ch != out_ch:
                b["ds_w"] = conv_w(out_ch, in_ch, 1)
                b["ds_bn"] = bn_p(out_ch)
            p["blocks"].append(b)
            in_ch, s = out_ch, 1
    p["fc_w"] = 0.1 * jax.random.normal(next(keys), (num_classes, 64), jnp.float32)
    p["fc_b"] = 0.1 * jax.random.normal(next(keys), (num_classes,), jnp.float32)
    return p


def prepare_params(tp):
    """One-time conversion: fold BN, transpose/stack conv taps, fuse the 1x1
    downsample weights into conv1, pre-cast matmul weights to bf16."""
    prep = {}
    sc, sh = _bn_fold(tp["bn1"])
    prep["stem"] = {"w": jnp.transpose(tp["conv1_w"], (2, 1, 0)),   # (3, 1, 16) f32
                    "scale": sc.reshape(1, -1), "shift": sh.reshape(1, -1)}

    blocks = []
    for b in tp["blocks"]:
        cout, cin, _ = b["conv1_w"].shape
        w1 = jnp.transpose(b["conv1_w"], (2, 1, 0))                 # (3, cin, cout)
        sc1, sh1 = _bn_fold(b["bn1"])
        if "ds_w" in b:
            wd = jnp.transpose(b["ds_w"][:, :, 0], (1, 0))          # (cin, cout)
            zero = jnp.zeros((1, cin, cout), jnp.float32)
            w1 = jnp.concatenate(
                [w1, jnp.concatenate([zero, wd[None], zero], axis=0)], axis=-1)
            dsc, dsh = _bn_fold(b["ds_bn"])
            sc1 = jnp.concatenate([sc1, dsc])
            sh1 = jnp.concatenate([sh1, dsh])
        sc2, sh2 = _bn_fold(b["bn2"])
        blocks.append({
            "stride": int(b["stride"]), "cout": int(cout),
            "w1": w1.astype(jnp.bfloat16),
            "sc1": sc1.reshape(1, -1), "sh1": sh1.reshape(1, -1),
            "w2": jnp.transpose(b["conv2_w"], (2, 1, 0)).astype(jnp.bfloat16),
            "sc2": sc2.reshape(1, -1), "sh2": sh2.reshape(1, -1)})
    prep["blocks"] = blocks
    prep["head"] = {"w": jnp.transpose(tp["fc_w"], (1, 0)),         # (64, nc)
                    "b": tp["fc_b"].reshape(1, -1)}
    return prep


def resnet_forward(prep, x_ncl):
    x = jnp.transpose(x_ncl, (0, 2, 1)).astype(jnp.float32)   # NCL -> NLC
    x = _stem_call(x, prep["stem"])
    blocks = prep["blocks"]
    for i, bp in enumerate(blocks):
        head = prep["head"] if i == len(blocks) - 1 else None
        x = _block_call(x, bp, head=head)                     # last call: (N, 1, nc)
    return x.reshape(x.shape[0], -1)


if __name__ == "__main__":
    key = jax.random.PRNGKey(0)
    pkey, xkey = jax.random.split(key)
    torch_params = init_torch_params(pkey, layers=(1, 1, 1), num_classes=1)
    prep = prepare_params(torch_params)
    fwd = jax.jit(functools.partial(resnet_forward, prep))
    # PyTorch Conv1d(1, 16, ...) implies input (N, 1, L); small shapes: N=2, L=16.
    x = jax.random.normal(xkey, (2, 1, 16), dtype=jnp.float32)
    out = fwd(x)
    jax.block_until_ready(out)
    assert out.shape == (2, 1) and out.dtype == jnp.float32
    print("KERNEL_OK")
</pallas_src>

<mosaic_0001>
module attributes {stable_mosaic.version = 11 : i64} {
  func.func @_stem_kernel(%arg0: i32, %arg1: memref<1x18x1xf32, #tpu.memory_space<vmem>>, %arg2: memref<3x1x16xf32, #tpu.memory_space<vmem>>, %arg3: memref<1x16xf32, #tpu.memory_space<vmem>>, %arg4: memref<1x16xf32, #tpu.memory_space<vmem>>, %arg5: memref<1x16x16xf32, #tpu.memory_space<vmem>>) attributes {dimension_semantics = [#tpu.dimension_semantics<parallel>], iteration_bounds = array<i64: 2>, scalar_prefetch = 0 : i64, scratch_operands = 0 : i64, tpu.core_type = #tpu.core_type<tc>, window_params = [{transform_indices = @transform_0, window_bounds = array<i64: 1, 18, 1>}, {pipeline_mode = #tpu.pipeline_mode<synchronous>, transform_indices = @transform_1, window_bounds = array<i64: 3, 1, 16>}, {pipeline_mode = #tpu.pipeline_mode<synchronous>, transform_indices = @transform_2, window_bounds = array<i64: 1, 16>}, {pipeline_mode = #tpu.pipeline_mode<synchronous>, transform_indices = @transform_3, window_bounds = array<i64: 1, 16>}, {transform_indices = @transform_4, window_bounds = array<i64: 1, 16, 16>}]} {
    %cst = arith.constant 0.000000e+00 : f32
    %0 = vector.broadcast %cst : f32 to vector<16x16xf32>
    %c0 = arith.constant 0 : index
    %c0_0 = arith.constant 0 : index
    %c0_1 = arith.constant 0 : index
    %1 = vector.load %arg1[%c0, %c0_0, %c0_1] : memref<1x18x1xf32, #tpu.memory_space<vmem>>, vector<1x16x1xf32>
    %2 = vector.shape_cast %1 : vector<1x16x1xf32> to vector<16x1xf32>
    %c0_2 = arith.constant 0 : index
    %c0_3 = arith.constant 0 : index
    %c0_4 = arith.constant 0 : index
    %3 = vector.load %arg2[%c0_2, %c0_3, %c0_4] : memref<3x1x16xf32, #tpu.memory_space<vmem>>, vector<1x1x16xf32>
    %4 = vector.shape_cast %3 : vector<1x1x16xf32> to vector<1x16xf32>
    %5 = vector.broadcast %2 : vector<16x1xf32> to vector<16x16xf32>
    %6 = vector.broadcast %4 : vector<1x16xf32> to vector<16x16xf32>
    %7 = arith.mulf %5, %6 : vector<16x16xf32>
    %8 = arith.addf %0, %7 : vector<16x16xf32>
    %c0_5 = arith.constant 0 : index
    %c1 = arith.constant 1 : index
    %c0_6 = arith.constant 0 : index
    %9 = vector.load %arg1[%c0_5, %c1, %c0_6] : memref<1x18x1xf32, #tpu.memory_space<vmem>>, vector<1x16x1xf32>
    %10 = vector.shape_cast %9 : vector<1x16x1xf32> to vector<16x1xf32>
    %c1_7 = arith.constant 1 : index
    %c0_8 = arith.constant 0 : index
    %c0_9 = arith.constant 0 : index
    %11 = vector.load %arg2[%c1_7, %c0_8, %c0_9] : memref<3x1x16xf32, #tpu.memory_space<vmem>>, vector<1x1x16xf32>
    %12 = vector.shape_cast %11 : vector<1x1x16xf32> to vector<1x16xf32>
    %13 = vector.broadcast %10 : vector<16x1xf32> to vector<16x16xf32>
    %14 = vector.broadcast %12 : vector<1x16xf32> to vector<16x16xf32>
    %15 = arith.mulf %13, %14 : vector<16x16xf32>
    %16 = arith.addf %8, %15 : vector<16x16xf32>
    %c0_10 = arith.constant 0 : index
    %c2 = arith.constant 2 : index
    %c0_11 = arith.constant 0 : index
    %17 = vector.load %arg1[%c0_10, %c2, %c0_11] : memref<1x18x1xf32, #tpu.memory_space<vmem>>, vector<1x16x1xf32>
    %18 = vector.shape_cast %17 : vector<1x16x1xf32> to vector<16x1xf32>
    %c2_12 = arith.constant 2 : index
    %c0_13 = arith.constant 0 : index
    %c0_14 = arith.constant 0 : index
    %19 = vector.load %arg2[%c2_12, %c0_13, %c0_14] : memref<3x1x16xf32, #tpu.memory_space<vmem>>, vector<1x1x16xf32>
    %20 = vector.shape_cast %19 : vector<1x1x16xf32> to vector<1x16xf32>
    %21 = vector.broadcast %18 : vector<16x1xf32> to vector<16x16xf32>
    %22 = vector.broadcast %20 : vector<1x16xf32> to vector<16x16xf32>
    %23 = arith.mulf %21, %22 : vector<16x16xf32>
    %24 = arith.addf %16, %23 : vector<16x16xf32>
    %c0_15 = arith.constant 0 : index
    %c0_16 = arith.constant 0 : index
    %25 = vector.load %arg3[%c0_15, %c0_16] : memref<1x16xf32, #tpu.memory_space<vmem>>, vector<1x16xf32>
    %26 = vector.broadcast %25 : vector<1x16xf32> to vector<16x16xf32>
    %27 = arith.mulf %24, %26 : vector<16x16xf32>
    %c0_17 = arith.constant 0 : index
    %c0_18 = arith.constant 0 : index
    %28 = vector.load %arg4[%c0_17, %c0_18] : memref<1x16xf32, #tpu.memory_space<vmem>>, vector<1x16xf32>
    %29 = vector.broadcast %28 : vector<1x16xf32> to vector<16x16xf32>
    %30 = arith.addf %27, %29 : vector<16x16xf32>
    %cst_19 = arith.constant 0.000000e+00 : f32
    %31 = vector.broadcast %cst_19 : f32 to vector<16x16xf32>
    %32 = arith.maximumf %30, %31 : vector<16x16xf32>
    %c0_20 = arith.constant 0 : index
    %c0_21 = arith.constant 0 : index
    %c0_22 = arith.constant 0 : index
    %33 = vector.load %arg5[%c0_20, %c0_21, %c0_22] : memref<1x16x16xf32, #tpu.memory_space<vmem>>, vector<1x16x16xf32>
    %34 = vector.shape_cast %33 : vector<1x16x16xf32> to vector<16x16xf32>
    %35 = vector.shape_cast %32 : vector<16x16xf32> to vector<1x16x16xf32>
    tpu.vector_store %arg5[%c0_20, %c0_21, %c0_22], %35 {strides = array<i32>} : memref<1x16x16xf32, #tpu.memory_space<vmem>>, vector<1x16x16xf32>,
    return
  }
  func.func @transform_0(%arg0: i32) -> (i32, i32, i32) {
    %c0_i32 = arith.constant 0 : i32
    %c0_i32_0 = arith.constant 0 : i32
    %c0_i32_1 = arith.constant 0 : i32
    return %arg0, %c0_i32, %c0_i32_0 : i32, i32, i32
  }
  func.func @transform_1(%arg0: i32) -> (i32, i32, i32) {
    %c0_i32 = arith.constant 0 : i32
    %c0_i32_0 = arith.constant 0 : i32
    %c0_i32_1 = arith.constant 0 : i32
    %c0_i32_2 = arith.constant 0 : i32
    return %c0_i32, %c0_i32_0, %c0_i32_1 : i32, i32, i32
  }
  func.func @transform_2(%arg0: i32) -> (i32, i32) {
    %c0_i32 = arith.constant 0 : i32
    %c0_i32_0 = arith.constant 0 : i32
    %c0_i32_1 = arith.constant 0 : i32
    return %c0_i32, %c0_i32_0 : i32, i32
  }
  func.func @transform_3(%arg0: i32) -> (i32, i32) {
    %c0_i32 = arith.constant 0 : i32
    %c0_i32_0 = arith.constant 0 : i32
    %c0_i32_1 = arith.constant 0 : i32
    return %c0_i32, %c0_i32_0 : i32, i32
  }
  func.func @transform_4(%arg0: i32) -> (i32, i32, i32) {
    %c0_i32 = arith.constant 0 : i32
    %c0_i32_0 = arith.constant 0 : i32
    %c0_i32_1 = arith.constant 0 : i32
    return %arg0, %c0_i32, %c0_i32_0 : i32, i32, i32
  }
}

module attributes {stable_mosaic.version = 11 : i64} {
  func.func @_block_kernel(%arg0: i32, %arg1: memref<1x18x16xf32, #tpu.memory_space<vmem>>, %arg2: memref<3x16x16xbf16, #tpu.memory_space<vmem>>, %arg3: memref<1x16xf32, #tpu.memory_space<vmem>>, %arg4: memref<1x16xf32, #tpu.memory_space<vmem>>, %arg5: memref<3x16x16xbf16, #tpu.memory_space<vmem>>, %arg6: memref<1x16xf32, #tpu.memory_space<vmem>>, %arg7: memref<1x16xf32, #tpu.memory_space<vmem>>, %arg8: memref<1x16x16xf32, #tpu.memory_space<vmem>>) attributes {dimension_semantics = [#tpu.dimension_semantics<parallel>], iteration_bounds = array<i64: 2>, scalar_prefetch = 0 : i64, scratch_operands = 0 : i64, tpu.core_type = #tpu.core_type<tc>, window_params = [{transform_indices = @transform_0, window_bounds = array<i64: 1, 18, 16>}, {pipeline_mode = #tpu.pipeline_mode<synchronous>, transform_indices = @transform_1, window_bounds = array<i64: 3, 16, 16>}, {pipeline_mode = #tpu.pipeline_mode<synchronous>, transform_indices = @transform_2, window_bounds = array<i64: 1, 16>}, {pipeline_mode = #tpu.pipeline_mode<synchronous>, transform_indices = @transform_3, window_bounds = array<i64: 1, 16>}, {pipeline_mode = #tpu.pipeline_mode<synchronous>, transform_indices = @transform_4, window_bounds = array<i64: 3, 16, 16>}, {pipeline_mode = #tpu.pipeline_mode<synchronous>, transform_indices = @transform_5, window_bounds = array<i64: 1, 16>}, {pipeline_mode = #tpu.pipeline_mode<synchronous>, transform_indices = @transform_6, window_bounds = array<i64: 1, 16>}, {transform_indices = @transform_7, window_bounds = array<i64: 1, 16, 16>}]} {
    %cst = arith.constant 0.000000e+00 : f32
    %0 = vector.broadcast %cst : f32 to vector<16x16xf32>
    %c0 = arith.constant 0 : index
    %c0_0 = arith.constant 0 : index
    %c0_1 = arith.constant 0 : index
    %1 = vector.load %arg1[%c0, %c0_0, %c0_1] : memref<1x18x16xf32, #tpu.memory_space<vmem>>, vector<1x16x16xf32>
    %2 = vector.shape_cast %1 : vector<1x16x16xf32> to vector<16x16xf32>
    %3 = arith.truncf %2 : vector<16x16xf32> to vector<16x16xbf16>
    %c0_2 = arith.constant 0 : index
    %c0_3 = arith.constant 0 : index
    %c0_4 = arith.constant 0 : index
    %4 = vector.load %arg2[%c0_2, %c0_3, %c0_4] : memref<3x16x16xbf16, #tpu.memory_space<vmem>>, vector<1x16x16xbf16>
    %5 = vector.shape_cast %4 : vector<1x16x16xbf16> to vector<16x16xbf16>
    %cst_5 = arith.constant dense<0.000000e+00> : vector<16x16xf32>
    %6 = tpu.matmul %3, %5, %cst_5 {dimension_numbers = #tpu.dot_dimension_numbers<[1], [0], [0], [1], [0, 0, 1, 1], [], []>} : vector<16x16xbf16>, vector<16x16xbf16>, vector<16x16xf32> -> vector<16x16xf32>
    %7 = arith.addf %0, %6 : vector<16x16xf32>
    %c0_6 = arith.constant 0 : index
    %c1 = arith.constant 1 : index
    %c0_7 = arith.constant 0 : index
    %8 = vector.load %arg1[%c0_6, %c1, %c0_7] : memref<1x18x16xf32, #tpu.memory_space<vmem>>, vector<1x16x16xf32>
    %9 = vector.shape_cast %8 : vector<1x16x16xf32> to vector<16x16xf32>
    %10 = arith.truncf %9 : vector<16x16xf32> to vector<16x16xbf16>
    %c1_8 = arith.constant 1 : index
    %c0_9 = arith.constant 0 : index
    %c0_10 = arith.constant 0 : index
    %11 = vector.load %arg2[%c1_8, %c0_9, %c0_10] : memref<3x16x16xbf16, #tpu.memory_space<vmem>>, vector<1x16x16xbf16>
    %12 = vector.shape_cast %11 : vector<1x16x16xbf16> to vector<16x16xbf16>
    %cst_11 = arith.constant dense<0.000000e+00> : vector<16x16xf32>
    %13 = tpu.matmul %10, %12, %cst_11 {dimension_numbers = #tpu.dot_dimension_numbers<[1], [0], [0], [1], [0, 0, 1, 1], [], []>} : vector<16x16xbf16>, vector<16x16xbf16>, vector<16x16xf32> -> vector<16x16xf32>
    %14 = arith.addf %7, %13 : vector<16x16xf32>
    %c0_12 = arith.constant 0 : index
    %c2 = arith.constant 2 : index
    %c0_13 = arith.constant 0 : index
    %15 = vector.load %arg1[%c0_12, %c2, %c0_13] : memref<1x18x16xf32, #tpu.memory_space<vmem>>, vector<1x16x16xf32>
    %16 = vector.shape_cast %15 : vector<1x16x16xf32> to vector<16x16xf32>
    %17 = arith.truncf %16 : vector<16x16xf32> to vector<16x16xbf16>
    %c2_14 = arith.constant 2 : index
    %c0_15 = arith.constant 0 : index
    %c0_16 = arith.constant 0 : index
    %18 = vector.load %arg2[%c2_14, %c0_15, %c0_16] : memref<3x16x16xbf16, #tpu.memory_space<vmem>>, vector<1x16x16xbf16>
    %19 = vector.shape_cast %18 : vector<1x16x16xbf16> to vector<16x16xbf16>
    %cst_17 = arith.constant dense<0.000000e+00> : vector<16x16xf32>
    %20 = tpu.matmul %17, %19, %cst_17 {dimension_numbers = #tpu.dot_dimension_numbers<[1], [0], [0], [1], [0, 0, 1, 1], [], []>} : vector<16x16xbf16>, vector<16x16xbf16>, vector<16x16xf32> -> vector<16x16xf32>
    %21 = arith.addf %14, %20 : vector<16x16xf32>
    %c0_18 = arith.constant 0 : index
    %c0_19 = arith.constant 0 : index
    %22 = vector.load %arg3[%c0_18, %c0_19] : memref<1x16xf32, #tpu.memory_space<vmem>>, vector<1x16xf32>
    %23 = vector.broadcast %22 : vector<1x16xf32> to vector<16x16xf32>
    %24 = arith.mulf %21, %23 : vector<16x16xf32>
    %c0_20 = arith.constant 0 : index
    %c0_21 = arith.constant 0 : index
    %25 = vector.load %arg4[%c0_20, %c0_21] : memref<1x16xf32, #tpu.memory_space<vmem>>, vector<1x16xf32>
    %26 = vector.broadcast %25 : vector<1x16xf32> to vector<16x16xf32>
    %27 = arith.addf %24, %26 : vector<16x16xf32>
    %cst_22 = arith.constant 0.000000e+00 : f32
    %28 = vector.broadcast %cst_22 : f32 to vector<16x16xf32>
    %29 = arith.maximumf %27, %28 : vector<16x16xf32>
    %c0_23 = arith.constant 0 : index
    %c1_24 = arith.constant 1 : index
    %c0_25 = arith.constant 0 : index
    %30 = vector.load %arg1[%c0_23, %c1_24, %c0_25] : memref<1x18x16xf32, #tpu.memory_space<vmem>>, vector<1x16x16xf32>
    %31 = vector.shape_cast %30 : vector<1x16x16xf32> to vector<16x16xf32>
    %cst_26 = arith.constant 0.000000e+00 : f32
    %32 = vector.broadcast %cst_26 : f32 to vector<16x16xf32>
    %33 = tpu.iota {dimensions = array<i32: 0>} : vector<16x16xi32>
    %34 = tpu.iota {dimensions = array<i32: 1>} : vector<16x16xi32>
    %c1_i32 = arith.constant 1 : i32
    %35 = vector.broadcast %c1_i32 : i32 to vector<16x16xi32>
    %36 = arith.muli %33, %35 : vector<16x16xi32>
    %c-1_i32 = arith.constant -1 : i32
    %37 = vector.broadcast %c-1_i32 : i32 to vector<16x16xi32>
    %38 = arith.addi %36, %37 : vector<16x16xi32>
    %39 = arith.cmpi eq, %34, %38 : vector<16x16xi32>
    %40 = arith.extui %39 : vector<16x16xi1> to vector<16x16xi32>
    %41 = arith.sitofp %40 : vector<16x16xi32> to vector<16x16xf32>
    %cst_27 = arith.constant dense<0.000000e+00> : vector<16x16xf32>
    %42 = tpu.matmul %41, %29, %cst_27 {dimension_numbers = #tpu.dot_dimension_numbers<[1], [0], [0], [1], [0, 0, 1, 1], [], []>} : vector<16x16xf32>, vector<16x16xf32>, vector<16x16xf32> -> vector<16x16xf32>
    %43 = arith.truncf %42 : vector<16x16xf32> to vector<16x16xbf16>
    %c0_28 = arith.constant 0 : index
    %c0_29 = arith.constant 0 : index
    %c0_30 = arith.constant 0 : index
    %44 = vector.load %arg5[%c0_28, %c0_29, %c0_30] : memref<3x16x16xbf16, #tpu.memory_space<vmem>>, vector<1x16x16xbf16>
    %45 = vector.shape_cast %44 : vector<1x16x16xbf16> to vector<16x16xbf16>
    %cst_31 = arith.constant dense<0.000000e+00> : vector<16x16xf32>
    %46 = tpu.matmul %43, %45, %cst_31 {dimension_numbers = #tpu.dot_dimension_numbers<[1], [0], [0], [1], [0, 0, 1, 1], [], []>} : vector<16x16xbf16>, vector<16x16xbf16>, vector<16x16xf32> -> vector<16x16xf32>
    %47 = arith.addf %32, %46 : vector<16x16xf32>
    %48 = arith.truncf %29 : vector<16x16xf32> to vector<16x16xbf16>
    %c1_32 = arith.constant 1 : index
    %c0_33 = arith.constant 0 : index
    %c0_34 = arith.constant 0 : index
    %49 = vector.load %arg5[%c1_32, %c0_33, %c0_34] : memref<3x16x16xbf16, #tpu.memory_space<vmem>>, vector<1x16x16xbf16>
    %50 = vector.shape_cast %49 : vector<1x16x16xbf16> to vector<16x16xbf16>
    %cst_35 = arith.constant dense<0.000000e+00> : vector<16x16xf32>
    %51 = tpu.matmul %48, %50, %cst_35 {dimension_numbers = #tpu.dot_dimension_numbers<[1], [0], [0], [1], [0, 0, 1, 1], [], []>} : vector<16x16xbf16>, vector<16x16xbf16>, vector<16x16xf32> -> vector<16x16xf32>
    %52 = arith.addf %47, %51 : vector<16x16xf32>
    %53 = tpu.iota {dimensions = array<i32: 0>} : vector<16x16xi32>
    %54 = tpu.iota {dimensions = array<i32: 1>} : vector<16x16xi32>
    %c1_i32_36 = arith.constant 1 : i32
    %55 = vector.broadcast %c1_i32_36 : i32 to vector<16x16xi32>
    %56 = arith.muli %53, %55 : vector<16x16xi32>
    %c1_i32_37 = arith.constant 1 : i32
    %57 = vector.broadcast %c1_i32_37 : i32 to vector<16x16xi32>
    %58 = arith.addi %56, %57 : vector<16x16xi32>
    %59 = arith.cmpi eq, %54, %58 : vector<16x16xi32>
    %60 = arith.extui %59 : vector<16x16xi1> to vector<16x16xi32>
    %61 = arith.sitofp %60 : vector<16x16xi32> to vector<16x16xf32>
    %cst_38 = arith.constant dense<0.000000e+00> : vector<16x16xf32>
    %62 = tpu.matmul %61, %29, %cst_38 {dimension_numbers = #tpu.dot_dimension_numbers<[1], [0], [0], [1], [0, 0, 1, 1], [], []>} : vector<16x16xf32>, vector<16x16xf32>, vector<16x16xf32> -> vector<16x16xf32>
    %63 = arith.truncf %62 : vector<16x16xf32> to vector<16x16xbf16>
    %c2_39 = arith.constant 2 : index
    %c0_40 = arith.constant 0 : index
    %c0_41 = arith.constant 0 : index
    %64 = vector.load %arg5[%c2_39, %c0_40, %c0_41] : memref<3x16x16xbf16, #tpu.memory_space<vmem>>, vector<1x16x16xbf16>
    %65 = vector.shape_cast %64 : vector<1x16x16xbf16> to vector<16x16xbf16>
    %cst_42 = arith.constant dense<0.000000e+00> : vector<16x16xf32>
    %66 = tpu.matmul %63, %65, %cst_42 {dimension_numbers = #tpu.dot_dimension_numbers<[1], [0], [0], [1], [0, 0, 1, 1], [], []>} : vector<16x16xbf16>, vector<16x16xbf16>, vector<16x16xf32> -> vector<16x16xf32>
    %67 = arith.addf %52, %66 : vector<16x16xf32>
    %c0_43 = arith.constant 0 : index
    %c0_44 = arith.constant 0 : index
    %68 = vector.load %arg6[%c0_43, %c0_44] : memref<1x16xf32, #tpu.memory_space<vmem>>, vector<1x16xf32>
    %69 = vector.broadcast %68 : vector<1x16xf32> to vector<16x16xf32>
    %70 = arith.mulf %67, %69 : vector<16x16xf32>
    %c0_45 = arith.constant 0 : index
    %c0_46 = arith.constant 0 : index
    %71 = vector.load %arg7[%c0_45, %c0_46] : memref<1x16xf32, #tpu.memory_space<vmem>>, vector<1x16xf32>
    %72 = vector.broadcast %71 : vector<1x16xf32> to vector<16x16xf32>
    %73 = arith.addf %70, %72 : vector<16x16xf32>
    %74 = arith.addf %73, %31 : vector<16x16xf32>
    %cst_47 = arith.constant 0.000000e+00 : f32
    %75 = vector.broadcast %cst_47 : f32 to vector<16x16xf32>
    %76 = arith.maximumf %74, %75 : vector<16x16xf32>
    %c0_48 = arith.constant 0 : index
    %c0_49 = arith.constant 0 : index
    %c0_50 = arith.constant 0 : index
    %77 = vector.load %arg8[%c0_48, %c0_49, %c0_50] : memref<1x16x16xf32, #tpu.memory_space<vmem>>, vector<1x16x16xf32>
    %78 = vector.shape_cast %77 : vector<1x16x16xf32> to vector<16x16xf32>
    %79 = vector.shape_cast %76 : vector<16x16xf32> to vector<1x16x16xf32>
    tpu.vector_store %arg8[%c0_48, %c0_49, %c0_50], %79 {strides = array<i32>} : memref<1x16x16xf32, #tpu.memory_space<vmem>>, vector<1x16x16xf32>,
    return
  }
  func.func @transform_0(%arg0: i32) -> (i32, i32, i32) {
    %c0_i32 = arith.constant 0 : i32
    %c0_i32_0 = arith.constant 0 : i32
    %c0_i32_1 = arith.constant 0 : i32
    return %arg0, %c0_i32, %c0_i32_0 : i32, i32, i32
  }
  func.func @transform_1(%arg0: i32) -> (i32, i32, i32) {
    %c0_i32 = arith.constant 0 : i32
    %c0_i32_0 = arith.constant 0 : i32
    %c0_i32_1 = arith.constant 0 : i32
    %c0_i32_2 = arith.constant 0 : i32
    return %c0_i32, %c0_i32_0, %c0_i32_1 : i32, i32, i32
  }
  func.func @transform_2(%arg0: i32) -> (i32, i32) {
    %c0_i32 = arith.constant 0 : i32
    %c0_i32_0 = arith.constant 0 : i32
    %c0_i32_1 = arith.constant 0 : i32
    return %c0_i32, %c0_i32_0 : i32, i32
  }
  func.func @transform_3(%arg0: i32) -> (i32, i32) {
    %c0_i32 = arith.constant 0 : i32
    %c0_i32_0 = arith.constant 0 : i32
    %c0_i32_1 = arith.constant 0 : i32
    return %c0_i32, %c0_i32_0 : i32, i32
  }
  func.func @transform_4(%arg0: i32) -> (i32, i32, i32) {
    %c0_i32 = arith.constant 0 : i32
    %c0_i32_0 = arith.constant 0 : i32
    %c0_i32_1 = arith.constant 0 : i32
    %c0_i32_2 = arith.constant 0 : i32
    return %c0_i32, %c0_i32_0, %c0_i32_1 : i32, i32, i32
  }
  func.func @transform_5(%arg0: i32) -> (i32, i32) {
    %c0_i32 = arith.constant 0 : i32
    %c0_i32_0 = arith.constant 0 : i32
    %c0_i32_1 = arith.constant 0 : i32
    return %c0_i32, %c0_i32_0 : i32, i32
  }
  func.func @transform_6(%arg0: i32) -> (i32, i32) {
    %c0_i32 = arith.constant 0 : i32
    %c0_i32_0 = arith.constant 0 : i32
    %c0_i32_1 = arith.constant 0 : i32
    return %c0_i32, %c0_i32_0 : i32, i32
  }
  func.func @transform_7(%arg0: i32) -> (i32, i32, i32) {
    %c0_i32 = arith.constant 0 : i32
    %c0_i32_0 = arith.constant 0 : i32
    %c0_i32_1 = arith.constant 0 : i32
    return %arg0, %c0_i32, %c0_i32_0 : i32, i32, i32
  }
}

module attributes {stable_mosaic.version = 11 : i64} {
  func.func @_block_kernel(%arg0: i32, %arg1: memref<1x18x16xf32, #tpu.memory_space<vmem>>, %arg2: memref<3x16x64xbf16, #tpu.memory_space<vmem>>, %arg3: memref<1x64xf32, #tpu.memory_space<vmem>>, %arg4: memref<1x64xf32, #tpu.memory_space<vmem>>, %arg5: memref<3x32x32xbf16, #tpu.memory_space<vmem>>, %arg6: memref<1x32xf32, #tpu.memory_space<vmem>>, %arg7: memref<1x32xf32, #tpu.memory_space<vmem>>, %arg8: memref<1x8x32xf32, #tpu.memory_space<vmem>>) attributes {dimension_semantics = [#tpu.dimension_semantics<parallel>], iteration_bounds = array<i64: 2>, scalar_prefetch = 0 : i64, scratch_operands = 0 : i64, tpu.core_type = #tpu.core_type<tc>, window_params = [{transform_indices = @transform_0, window_bounds = array<i64: 1, 18, 16>}, {pipeline_mode = #tpu.pipeline_mode<synchronous>, transform_indices = @transform_1, window_bounds = array<i64: 3, 16, 64>}, {pipeline_mode = #tpu.pipeline_mode<synchronous>, transform_indices = @transform_2, window_bounds = array<i64: 1, 64>}, {pipeline_mode = #tpu.pipeline_mode<synchronous>, transform_indices = @transform_3, window_bounds = array<i64: 1, 64>}, {pipeline_mode = #tpu.pipeline_mode<synchronous>, transform_indices = @transform_4, window_bounds = array<i64: 3, 32, 32>}, {pipeline_mode = #tpu.pipeline_mode<synchronous>, transform_indices = @transform_5, window_bounds = array<i64: 1, 32>}, {pipeline_mode = #tpu.pipeline_mode<synchronous>, transform_indices = @transform_6, window_bounds = array<i64: 1, 32>}, {transform_indices = @transform_7, window_bounds = array<i64: 1, 8, 32>}]} {
    %cst = arith.constant 0.000000e+00 : f32
    %0 = vector.broadcast %cst : f32 to vector<16x64xf32>
    %c0 = arith.constant 0 : index
    %c0_0 = arith.constant 0 : index
    %c0_1 = arith.constant 0 : index
    %1 = vector.load %arg1[%c0, %c0_0, %c0_1] : memref<1x18x16xf32, #tpu.memory_space<vmem>>, vector<1x16x16xf32>
    %2 = vector.shape_cast %1 : vector<1x16x16xf32> to vector<16x16xf32>
    %3 = arith.truncf %2 : vector<16x16xf32> to vector<16x16xbf16>
    %c0_2 = arith.constant 0 : index
    %c0_3 = arith.constant 0 : index
    %c0_4 = arith.constant 0 : index
    %4 = vector.load %arg2[%c0_2, %c0_3, %c0_4] : memref<3x16x64xbf16, #tpu.memory_space<vmem>>, vector<1x16x64xbf16>
    %5 = vector.shape_cast %4 : vector<1x16x64xbf16> to vector<16x64xbf16>
    %cst_5 = arith.constant dense<0.000000e+00> : vector<16x64xf32>
    %6 = tpu.matmul %3, %5, %cst_5 {dimension_numbers = #tpu.dot_dimension_numbers<[1], [0], [0], [1], [0, 0, 1, 1], [], []>} : vector<16x16xbf16>, vector<16x64xbf16>, vector<16x64xf32> -> vector<16x64xf32>
    %7 = arith.addf %0, %6 : vector<16x64xf32>
    %c0_6 = arith.constant 0 : index
    %c1 = arith.constant 1 : index
    %c0_7 = arith.constant 0 : index
    %8 = vector.load %arg1[%c0_6, %c1, %c0_7] : memref<1x18x16xf32, #tpu.memory_space<vmem>>, vector<1x16x16xf32>
    %9 = vector.shape_cast %8 : vector<1x16x16xf32> to vector<16x16xf32>
    %10 = arith.truncf %9 : vector<16x16xf32> to vector<16x16xbf16>
    %c1_8 = arith.constant 1 : index
    %c0_9 = arith.constant 0 : index
    %c0_10 = arith.constant 0 : index
    %11 = vector.load %arg2[%c1_8, %c0_9, %c0_10] : memref<3x16x64xbf16, #tpu.memory_space<vmem>>, vector<1x16x64xbf16>
    %12 = vector.shape_cast %11 : vector<1x16x64xbf16> to vector<16x64xbf16>
    %cst_11 = arith.constant dense<0.000000e+00> : vector<16x64xf32>
    %13 = tpu.matmul %10, %12, %cst_11 {dimension_numbers = #tpu.dot_dimension_numbers<[1], [0], [0], [1], [0, 0, 1, 1], [], []>} : vector<16x16xbf16>, vector<16x64xbf16>, vector<16x64xf32> -> vector<16x64xf32>
    %14 = arith.addf %7, %13 : vector<16x64xf32>
    %c0_12 = arith.constant 0 : index
    %c2 = arith.constant 2 : index
    %c0_13 = arith.constant 0 : index
    %15 = vector.load %arg1[%c0_12, %c2, %c0_13] : memref<1x18x16xf32, #tpu.memory_space<vmem>>, vector<1x16x16xf32>
    %16 = vector.shape_cast %15 : vector<1x16x16xf32> to vector<16x16xf32>
    %17 = arith.truncf %16 : vector<16x16xf32> to vector<16x16xbf16>
    %c2_14 = arith.constant 2 : index
    %c0_15 = arith.constant 0 : index
    %c0_16 = arith.constant 0 : index
    %18 = vector.load %arg2[%c2_14, %c0_15, %c0_16] : memref<3x16x64xbf16, #tpu.memory_space<vmem>>, vector<1x16x64xbf16>
    %19 = vector.shape_cast %18 : vector<1x16x64xbf16> to vector<16x64xbf16>
    %cst_17 = arith.constant dense<0.000000e+00> : vector<16x64xf32>
    %20 = tpu.matmul %17, %19, %cst_17 {dimension_numbers = #tpu.dot_dimension_numbers<[1], [0], [0], [1], [0, 0, 1, 1], [], []>} : vector<16x16xbf16>, vector<16x64xbf16>, vector<16x64xf32> -> vector<16x64xf32>
    %21 = arith.addf %14, %20 : vector<16x64xf32>
    %22 = tpu.iota {dimensions = array<i32: 0>} : vector<8x16xi32>
    %23 = tpu.iota {dimensions = array<i32: 1>} : vector<8x16xi32>
    %c2_i32 = arith.constant 2 : i32
    %24 = vector.broadcast %c2_i32 : i32 to vector<8x16xi32>
    %25 = arith.muli %22, %24 : vector<8x16xi32>
    %c0_i32 = arith.constant 0 : i32
    %26 = vector.broadcast %c0_i32 : i32 to vector<8x16xi32>
    %27 = arith.addi %25, %26 : vector<8x16xi32>
    %28 = arith.cmpi eq, %23, %27 : vector<8x16xi32>
    %29 = arith.extui %28 : vector<8x16xi1> to vector<8x16xi32>
    %30 = arith.sitofp %29 : vector<8x16xi32> to vector<8x16xf32>
    %cst_18 = arith.constant dense<0.000000e+00> : vector<8x64xf32>
    %31 = tpu.matmul %30, %21, %cst_18 {dimension_numbers = #tpu.dot_dimension_numbers<[1], [0], [0], [1], [0, 0, 1, 1], [], []>} : vector<8x16xf32>, vector<16x64xf32>, vector<8x64xf32> -> vector<8x64xf32>
    %c0_19 = arith.constant 0 : index
    %c0_20 = arith.constant 0 : index
    %32 = vector.load %arg3[%c0_19, %c0_20] : memref<1x64xf32, #tpu.memory_space<vmem>>, vector<1x64xf32>
    %33 = vector.broadcast %32 : vector<1x64xf32> to vector<8x64xf32>
    %34 = arith.mulf %31, %33 : vector<8x64xf32>
    %c0_21 = arith.constant 0 : index
    %c0_22 = arith.constant 0 : index
    %35 = vector.load %arg4[%c0_21, %c0_22] : memref<1x64xf32, #tpu.memory_space<vmem>>, vector<1x64xf32>
    %36 = vector.broadcast %35 : vector<1x64xf32> to vector<8x64xf32>
    %37 = arith.addf %34, %36 : vector<8x64xf32>
    %38 = vector.extract_strided_slice %37 {offsets = [0, 0], sizes = [8, 32], strides = [1, 1]} : vector<8x64xf32> to vector<8x32xf32>
    %cst_23 = arith.constant 0.000000e+00 : f32
    %39 = vector.broadcast %cst_23 : f32 to vector<8x32xf32>
    %40 = arith.maximumf %38, %39 : vector<8x32xf32>
    %41 = vector.extract_strided_slice %37 {offsets = [0, 32], sizes = [8, 32], strides = [1, 1]} : vector<8x64xf32> to vector<8x32xf32>
    %cst_24 = arith.constant 0.000000e+00 : f32
    %42 = vector.broadcast %cst_24 : f32 to vector<8x32xf32>
    %43 = tpu.iota {dimensions = array<i32: 0>} : vector<8x8xi32>
    %44 = tpu.iota {dimensions = array<i32: 1>} : vector<8x8xi32>
    %c1_i32 = arith.constant 1 : i32
    %45 = vector.broadcast %c1_i32 : i32 to vector<8x8xi32>
    %46 = arith.muli %43, %45 : vector<8x8xi32>
    %c-1_i32 = arith.constant -1 : i32
    %47 = vector.broadcast %c-1_i32 : i32 to vector<8x8xi32>
    %48 = arith.addi %46, %47 : vector<8x8xi32>
    %49 = arith.cmpi eq, %44, %48 : vector<8x8xi32>
    %50 = arith.extui %49 : vector<8x8xi1> to vector<8x8xi32>
    %51 = arith.sitofp %50 : vector<8x8xi32> to vector<8x8xf32>
    %cst_25 = arith.constant dense<0.000000e+00> : vector<8x32xf32>
    %52 = tpu.matmul %51, %40, %cst_25 {dimension_numbers = #tpu.dot_dimension_numbers<[1], [0], [0], [1], [0, 0, 1, 1], [], []>} : vector<8x8xf32>, vector<8x32xf32>, vector<8x32xf32> -> vector<8x32xf32>
    %53 = arith.truncf %52 : vector<8x32xf32> to vector<8x32xbf16>
    %c0_26 = arith.constant 0 : index
    %c0_27 = arith.constant 0 : index
    %c0_28 = arith.constant 0 : index
    %54 = vector.load %arg5[%c0_26, %c0_27, %c0_28] : memref<3x32x32xbf16, #tpu.memory_space<vmem>>, vector<1x32x32xbf16>
    %55 = vector.shape_cast %54 : vector<1x32x32xbf16> to vector<32x32xbf16>
    %cst_29 = arith.constant dense<0.000000e+00> : vector<8x32xf32>
    %56 = tpu.matmul %53, %55, %cst_29 {dimension_numbers = #tpu.dot_dimension_numbers<[1], [0], [0], [1], [0, 0, 1, 1], [], []>} : vector<8x32xbf16>, vector<32x32xbf16>, vector<8x32xf32> -> vector<8x32xf32>
    %57 = arith.addf %42, %56 : vector<8x32xf32>
    %58 = arith.truncf %40 : vector<8x32xf32> to vector<8x32xbf16>
    %c1_30 = arith.constant 1 : index
    %c0_31 = arith.constant 0 : index
    %c0_32 = arith.constant 0 : index
    %59 = vector.load %arg5[%c1_30, %c0_31, %c0_32] : memref<3x32x32xbf16, #tpu.memory_space<vmem>>, vector<1x32x32xbf16>
    %60 = vector.shape_cast %59 : vector<1x32x32xbf16> to vector<32x32xbf16>
    %cst_33 = arith.constant dense<0.000000e+00> : vector<8x32xf32>
    %61 = tpu.matmul %58, %60, %cst_33 {dimension_numbers = #tpu.dot_dimension_numbers<[1], [0], [0], [1], [0, 0, 1, 1], [], []>} : vector<8x32xbf16>, vector<32x32xbf16>, vector<8x32xf32> -> vector<8x32xf32>
    %62 = arith.addf %57, %61 : vector<8x32xf32>
    %63 = tpu.iota {dimensions = array<i32: 0>} : vector<8x8xi32>
    %64 = tpu.iota {dimensions = array<i32: 1>} : vector<8x8xi32>
    %c1_i32_34 = arith.constant 1 : i32
    %65 = vector.broadcast %c1_i32_34 : i32 to vector<8x8xi32>
    %66 = arith.muli %63, %65 : vector<8x8xi32>
    %c1_i32_35 = arith.constant 1 : i32
    %67 = vector.broadcast %c1_i32_35 : i32 to vector<8x8xi32>
    %68 = arith.addi %66, %67 : vector<8x8xi32>
    %69 = arith.cmpi eq, %64, %68 : vector<8x8xi32>
    %70 = arith.extui %69 : vector<8x8xi1> to vector<8x8xi32>
    %71 = arith.sitofp %70 : vector<8x8xi32> to vector<8x8xf32>
    %cst_36 = arith.constant dense<0.000000e+00> : vector<8x32xf32>
    %72 = tpu.matmul %71, %40, %cst_36 {dimension_numbers = #tpu.dot_dimension_numbers<[1], [0], [0], [1], [0, 0, 1, 1], [], []>} : vector<8x8xf32>, vector<8x32xf32>, vector<8x32xf32> -> vector<8x32xf32>
    %73 = arith.truncf %72 : vector<8x32xf32> to vector<8x32xbf16>
    %c2_37 = arith.constant 2 : index
    %c0_38 = arith.constant 0 : index
    %c0_39 = arith.constant 0 : index
    %74 = vector.load %arg5[%c2_37, %c0_38, %c0_39] : memref<3x32x32xbf16, #tpu.memory_space<vmem>>, vector<1x32x32xbf16>
    %75 = vector.shape_cast %74 : vector<1x32x32xbf16> to vector<32x32xbf16>
    %cst_40 = arith.constant dense<0.000000e+00> : vector<8x32xf32>
    %76 = tpu.matmul %73, %75, %cst_40 {dimension_numbers = #tpu.dot_dimension_numbers<[1], [0], [0], [1], [0, 0, 1, 1], [], []>} : vector<8x32xbf16>, vector<32x32xbf16>, vector<8x32xf32> -> vector<8x32xf32>
    %77 = arith.addf %62, %76 : vector<8x32xf32>
    %c0_41 = arith.constant 0 : index
    %c0_42 = arith.constant 0 : index
    %78 = vector.load %arg6[%c0_41, %c0_42] : memref<1x32xf32, #tpu.memory_space<vmem>>, vector<1x32xf32>
    %79 = vector.broadcast %78 : vector<1x32xf32> to vector<8x32xf32>
    %80 = arith.mulf %77, %79 : vector<8x32xf32>
    %c0_43 = arith.constant 0 : index
    %c0_44 = arith.constant 0 : index
    %81 = vector.load %arg7[%c0_43, %c0_44] : memref<1x32xf32, #tpu.memory_space<vmem>>, vector<1x32xf32>
    %82 = vector.broadcast %81 : vector<1x32xf32> to vector<8x32xf32>
    %83 = arith.addf %80, %82 : vector<8x32xf32>
    %84 = arith.addf %83, %41 : vector<8x32xf32>
    %cst_45 = arith.constant 0.000000e+00 : f32
    %85 = vector.broadcast %cst_45 : f32 to vector<8x32xf32>
    %86 = arith.maximumf %84, %85 : vector<8x32xf32>
    %c0_46 = arith.constant 0 : index
    %c0_47 = arith.constant 0 : index
    %c0_48 = arith.constant 0 : index
    %87 = vector.load %arg8[%c0_46, %c0_47, %c0_48] : memref<1x8x32xf32, #tpu.memory_space<vmem>>, vector<1x8x32xf32>
    %88 = vector.shape_cast %87 : vector<1x8x32xf32> to vector<8x32xf32>
    %89 = vector.shape_cast %86 : vector<8x32xf32> to vector<1x8x32xf32>
    tpu.vector_store %arg8[%c0_46, %c0_47, %c0_48], %89 {strides = array<i32>} : memref<1x8x32xf32, #tpu.memory_space<vmem>>, vector<1x8x32xf32>,
    return
  }
  func.func @transform_0(%arg0: i32) -> (i32, i32, i32) {
    %c0_i32 = arith.constant 0 : i32
    %c0_i32_0 = arith.constant 0 : i32
    %c0_i32_1 = arith.constant 0 : i32
    return %arg0, %c0_i32, %c0_i32_0 : i32, i32, i32
  }
  func.func @transform_1(%arg0: i32) -> (i32, i32, i32) {
    %c0_i32 = arith.constant 0 : i32
    %c0_i32_0 = arith.constant 0 : i32
    %c0_i32_1 = arith.constant 0 : i32
    %c0_i32_2 = arith.constant 0 : i32
    return %c0_i32, %c0_i32_0, %c0_i32_1 : i32, i32, i32
  }
  func.func @transform_2(%arg0: i32) -> (i32, i32) {
    %c0_i32 = arith.constant 0 : i32
    %c0_i32_0 = arith.constant 0 : i32
    %c0_i32_1 = arith.constant 0 : i32
    return %c0_i32, %c0_i32_0 : i32, i32
  }
  func.func @transform_3(%arg0: i32) -> (i32, i32) {
    %c0_i32 = arith.constant 0 : i32
    %c0_i32_0 = arith.constant 0 : i32
    %c0_i32_1 = arith.constant 0 : i32
    return %c0_i32, %c0_i32_0 : i32, i32
  }
  func.func @transform_4(%arg0: i32) -> (i32, i32, i32) {
    %c0_i32 = arith.constant 0 : i32
    %c0_i32_0 = arith.constant 0 : i32
    %c0_i32_1 = arith.constant 0 : i32
    %c0_i32_2 = arith.constant 0 : i32
    return %c0_i32, %c0_i32_0, %c0_i32_1 : i32, i32, i32
  }
  func.func @transform_5(%arg0: i32) -> (i32, i32) {
    %c0_i32 = arith.constant 0 : i32
    %c0_i32_0 = arith.constant 0 : i32
    %c0_i32_1 = arith.constant 0 : i32
    return %c0_i32, %c0_i32_0 : i32, i32
  }
  func.func @transform_6(%arg0: i32) -> (i32, i32) {
    %c0_i32 = arith.constant 0 : i32
    %c0_i32_0 = arith.constant 0 : i32
    %c0_i32_1 = arith.constant 0 : i32
    return %c0_i32, %c0_i32_0 : i32, i32
  }
  func.func @transform_7(%arg0: i32) -> (i32, i32, i32) {
    %c0_i32 = arith.constant 0 : i32
    %c0_i32_0 = arith.constant 0 : i32
    %c0_i32_1 = arith.constant 0 : i32
    return %arg0, %c0_i32, %c0_i32_0 : i32, i32, i32
  }
}

module attributes {stable_mosaic.version = 11 : i64} {
  func.func @_block_kernel(%arg0: i32, %arg1: memref<1x10x32xf32, #tpu.memory_space<vmem>>, %arg2: memref<3x32x128xbf16, #tpu.memory_space<vmem>>, %arg3: memref<1x128xf32, #tpu.memory_space<vmem>>, %arg4: memref<1x128xf32, #tpu.memory_space<vmem>>, %arg5: memref<3x64x64xbf16, #tpu.memory_space<vmem>>, %arg6: memref<1x64xf32, #tpu.memory_space<vmem>>, %arg7: memref<1x64xf32, #tpu.memory_space<vmem>>, %arg8: memref<64x1xf32, #tpu.memory_space<vmem>>, %arg9: memref<1x1xf32, #tpu.memory_space<vmem>>, %arg10: memref<1x1x1xf32, #tpu.memory_space<vmem>>) attributes {dimension_semantics = [#tpu.dimension_semantics<parallel>], iteration_bounds = array<i64: 2>, scalar_prefetch = 0 : i64, scratch_operands = 0 : i64, tpu.core_type = #tpu.core_type<tc>, window_params = [{transform_indices = @transform_0, window_bounds = array<i64: 1, 10, 32>}, {pipeline_mode = #tpu.pipeline_mode<synchronous>, transform_indices = @transform_1, window_bounds = array<i64: 3, 32, 128>}, {pipeline_mode = #tpu.pipeline_mode<synchronous>, transform_indices = @transform_2, window_bounds = array<i64: 1, 128>}, {pipeline_mode = #tpu.pipeline_mode<synchronous>, transform_indices = @transform_3, window_bounds = array<i64: 1, 128>}, {pipeline_mode = #tpu.pipeline_mode<synchronous>, transform_indices = @transform_4, window_bounds = array<i64: 3, 64, 64>}, {pipeline_mode = #tpu.pipeline_mode<synchronous>, transform_indices = @transform_5, window_bounds = array<i64: 1, 64>}, {pipeline_mode = #tpu.pipeline_mode<synchronous>, transform_indices = @transform_6, window_bounds = array<i64: 1, 64>}, {pipeline_mode = #tpu.pipeline_mode<synchronous>, transform_indices = @transform_7, window_bounds = array<i64: 64, 1>}, {pipeline_mode = #tpu.pipeline_mode<synchronous>, transform_indices = @transform_8, window_bounds = array<i64: 1, 1>}, {transform_indices = @transform_9, window_bounds = array<i64: 1, 1, 1>}]} {
    %cst = arith.constant 0.000000e+00 : f32
    %0 = vector.broadcast %cst : f32 to vector<8x128xf32>
    %c0 = arith.constant 0 : index
    %c0_0 = arith.constant 0 : index
    %c0_1 = arith.constant 0 : index
    %1 = vector.load %arg1[%c0, %c0_0, %c0_1] : memref<1x10x32xf32, #tpu.memory_space<vmem>>, vector<1x8x32xf32>
    %2 = vector.shape_cast %1 : vector<1x8x32xf32> to vector<8x32xf32>
    %3 = arith.truncf %2 : vector<8x32xf32> to vector<8x32xbf16>
    %c0_2 = arith.constant 0 : index
    %c0_3 = arith.constant 0 : index
    %c0_4 = arith.constant 0 : index
    %4 = vector.load %arg2[%c0_2, %c0_3, %c0_4] : memref<3x32x128xbf16, #tpu.memory_space<vmem>>, vector<1x32x128xbf16>
    %5 = vector.shape_cast %4 : vector<1x32x128xbf16> to vector<32x128xbf16>
    %cst_5 = arith.constant dense<0.000000e+00> : vector<8x128xf32>
    %6 = tpu.matmul %3, %5, %cst_5 {dimension_numbers = #tpu.dot_dimension_numbers<[1], [0], [0], [1], [0, 0, 1, 1], [], []>} : vector<8x32xbf16>, vector<32x128xbf16>, vector<8x128xf32> -> vector<8x128xf32>
    %7 = arith.addf %0, %6 : vector<8x128xf32>
    %c0_6 = arith.constant 0 : index
    %c1 = arith.constant 1 : index
    %c0_7 = arith.constant 0 : index
    %8 = vector.load %arg1[%c0_6, %c1, %c0_7] : memref<1x10x32xf32, #tpu.memory_space<vmem>>, vector<1x8x32xf32>
    %9 = vector.shape_cast %8 : vector<1x8x32xf32> to vector<8x32xf32>
    %10 = arith.truncf %9 : vector<8x32xf32> to vector<8x32xbf16>
    %c1_8 = arith.constant 1 : index
    %c0_9 = arith.constant 0 : index
    %c0_10 = arith.constant 0 : index
    %11 = vector.load %arg2[%c1_8, %c0_9, %c0_10] : memref<3x32x128xbf16, #tpu.memory_space<vmem>>, vector<1x32x128xbf16>
    %12 = vector.shape_cast %11 : vector<1x32x128xbf16> to vector<32x128xbf16>
    %cst_11 = arith.constant dense<0.000000e+00> : vector<8x128xf32>
    %13 = tpu.matmul %10, %12, %cst_11 {dimension_numbers = #tpu.dot_dimension_numbers<[1], [0], [0], [1], [0, 0, 1, 1], [], []>} : vector<8x32xbf16>, vector<32x128xbf16>, vector<8x128xf32> -> vector<8x128xf32>
    %14 = arith.addf %7, %13 : vector<8x128xf32>
    %c0_12 = arith.constant 0 : index
    %c2 = arith.constant 2 : index
    %c0_13 = arith.constant 0 : index
    %15 = vector.load %arg1[%c0_12, %c2, %c0_13] : memref<1x10x32xf32, #tpu.memory_space<vmem>>, vector<1x8x32xf32>
    %16 = vector.shape_cast %15 : vector<1x8x32xf32> to vector<8x32xf32>
    %17 = arith.truncf %16 : vector<8x32xf32> to vector<8x32xbf16>
    %c2_14 = arith.constant 2 : index
    %c0_15 = arith.constant 0 : index
    %c0_16 = arith.constant 0 : index
    %18 = vector.load %arg2[%c2_14, %c0_15, %c0_16] : memref<3x32x128xbf16, #tpu.memory_space<vmem>>, vector<1x32x128xbf16>
    %19 = vector.shape_cast %18 : vector<1x32x128xbf16> to vector<32x128xbf16>
    %cst_17 = arith.constant dense<0.000000e+00> : vector<8x128xf32>
    %20 = tpu.matmul %17, %19, %cst_17 {dimension_numbers = #tpu.dot_dimension_numbers<[1], [0], [0], [1], [0, 0, 1, 1], [], []>} : vector<8x32xbf16>, vector<32x128xbf16>, vector<8x128xf32> -> vector<8x128xf32>
    %21 = arith.addf %14, %20 : vector<8x128xf32>
    %22 = tpu.iota {dimensions = array<i32: 0>} : vector<4x8xi32>
    %23 = tpu.iota {dimensions = array<i32: 1>} : vector<4x8xi32>
    %c2_i32 = arith.constant 2 : i32
    %24 = vector.broadcast %c2_i32 : i32 to vector<4x8xi32>
    %25 = arith.muli %22, %24 : vector<4x8xi32>
    %c0_i32 = arith.constant 0 : i32
    %26 = vector.broadcast %c0_i32 : i32 to vector<4x8xi32>
    %27 = arith.addi %25, %26 : vector<4x8xi32>
    %28 = arith.cmpi eq, %23, %27 : vector<4x8xi32>
    %29 = arith.extui %28 : vector<4x8xi1> to vector<4x8xi32>
    %30 = arith.sitofp %29 : vector<4x8xi32> to vector<4x8xf32>
    %cst_18 = arith.constant dense<0.000000e+00> : vector<4x128xf32>
    %31 = tpu.matmul %30, %21, %cst_18 {dimension_numbers = #tpu.dot_dimension_numbers<[1], [0], [0], [1], [0, 0, 1, 1], [], []>} : vector<4x8xf32>, vector<8x128xf32>, vector<4x128xf32> -> vector<4x128xf32>
    %c0_19 = arith.constant 0 : index
    %c0_20 = arith.constant 0 : index
    %32 = vector.load %arg3[%c0_19, %c0_20] : memref<1x128xf32, #tpu.memory_space<vmem>>, vector<1x128xf32>
    %33 = vector.broadcast %32 : vector<1x128xf32> to vector<4x128xf32>
    %34 = arith.mulf %31, %33 : vector<4x128xf32>
    %c0_21 = arith.constant 0 : index
    %c0_22 = arith.constant 0 : index
    %35 = vector.load %arg4[%c0_21, %c0_22] : memref<1x128xf32, #tpu.memory_space<vmem>>, vector<1x128xf32>
    %36 = vector.broadcast %35 : vector<1x128xf32> to vector<4x128xf32>
    %37 = arith.addf %34, %36 : vector<4x128xf32>
    %38 = vector.extract_strided_slice %37 {offsets = [0, 0], sizes = [4, 64], strides = [1, 1]} : vector<4x128xf32> to vector<4x64xf32>
    %cst_23 = arith.constant 0.000000e+00 : f32
    %39 = vector.broadcast %cst_23 : f32 to vector<4x64xf32>
    %40 = arith.maximumf %38, %39 : vector<4x64xf32>
    %41 = vector.extract_strided_slice %37 {offsets = [0, 64], sizes = [4, 64], strides = [1, 1]} : vector<4x128xf32> to vector<4x64xf32>
    %cst_24 = arith.constant 0.000000e+00 : f32
    %42 = vector.broadcast %cst_24 : f32 to vector<4x64xf32>
    %43 = tpu.iota {dimensions = array<i32: 0>} : vector<4x4xi32>
    %44 = tpu.iota {dimensions = array<i32: 1>} : vector<4x4xi32>
    %c1_i32 = arith.constant 1 : i32
    %45 = vector.broadcast %c1_i32 : i32 to vector<4x4xi32>
    %46 = arith.muli %43, %45 : vector<4x4xi32>
    %c-1_i32 = arith.constant -1 : i32
    %47 = vector.broadcast %c-1_i32 : i32 to vector<4x4xi32>
    %48 = arith.addi %46, %47 : vector<4x4xi32>
    %49 = arith.cmpi eq, %44, %48 : vector<4x4xi32>
    %50 = arith.extui %49 : vector<4x4xi1> to vector<4x4xi32>
    %51 = arith.sitofp %50 : vector<4x4xi32> to vector<4x4xf32>
    %cst_25 = arith.constant dense<0.000000e+00> : vector<4x64xf32>
    %52 = tpu.matmul %51, %40, %cst_25 {dimension_numbers = #tpu.dot_dimension_numbers<[1], [0], [0], [1], [0, 0, 1, 1], [], []>} : vector<4x4xf32>, vector<4x64xf32>, vector<4x64xf32> -> vector<4x64xf32>
    %53 = arith.truncf %52 : vector<4x64xf32> to vector<4x64xbf16>
    %c0_26 = arith.constant 0 : index
    %c0_27 = arith.constant 0 : index
    %c0_28 = arith.constant 0 : index
    %54 = vector.load %arg5[%c0_26, %c0_27, %c0_28] : memref<3x64x64xbf16, #tpu.memory_space<vmem>>, vector<1x64x64xbf16>
    %55 = vector.shape_cast %54 : vector<1x64x64xbf16> to vector<64x64xbf16>
    %cst_29 = arith.constant dense<0.000000e+00> : vector<4x64xf32>
    %56 = tpu.matmul %53, %55, %cst_29 {dimension_numbers = #tpu.dot_dimension_numbers<[1], [0], [0], [1], [0, 0, 1, 1], [], []>} : vector<4x64xbf16>, vector<64x64xbf16>, vector<4x64xf32> -> vector<4x64xf32>
    %57 = arith.addf %42, %56 : vector<4x64xf32>
    %58 = arith.truncf %40 : vector<4x64xf32> to vector<4x64xbf16>
    %c1_30 = arith.constant 1 : index
    %c0_31 = arith.constant 0 : index
    %c0_32 = arith.constant 0 : index
    %59 = vector.load %arg5[%c1_30, %c0_31, %c0_32] : memref<3x64x64xbf16, #tpu.memory_space<vmem>>, vector<1x64x64xbf16>
    %60 = vector.shape_cast %59 : vector<1x64x64xbf16> to vector<64x64xbf16>
    %cst_33 = arith.constant dense<0.000000e+00> : vector<4x64xf32>
    %61 = tpu.matmul %58, %60, %cst_33 {dimension_numbers = #tpu.dot_dimension_numbers<[1], [0], [0], [1], [0, 0, 1, 1], [], []>} : vector<4x64xbf16>, vector<64x64xbf16>, vector<4x64xf32> -> vector<4x64xf32>
    %62 = arith.addf %57, %61 : vector<4x64xf32>
    %63 = tpu.iota {dimensions = array<i32: 0>} : vector<4x4xi32>
    %64 = tpu.iota {dimensions = array<i32: 1>} : vector<4x4xi32>
    %c1_i32_34 = arith.constant 1 : i32
    %65 = vector.broadcast %c1_i32_34 : i32 to vector<4x4xi32>
    %66 = arith.muli %63, %65 : vector<4x4xi32>
    %c1_i32_35 = arith.constant 1 : i32
    %67 = vector.broadcast %c1_i32_35 : i32 to vector<4x4xi32>
    %68 = arith.addi %66, %67 : vector<4x4xi32>
    %69 = arith.cmpi eq, %64, %68 : vector<4x4xi32>
    %70 = arith.extui %69 : vector<4x4xi1> to vector<4x4xi32>
    %71 = arith.sitofp %70 : vector<4x4xi32> to vector<4x4xf32>
    %cst_36 = arith.constant dense<0.000000e+00> : vector<4x64xf32>
    %72 = tpu.matmul %71, %40, %cst_36 {dimension_numbers = #tpu.dot_dimension_numbers<[1], [0], [0], [1], [0, 0, 1, 1], [], []>} : vector<4x4xf32>, vector<4x64xf32>, vector<4x64xf32> -> vector<4x64xf32>
    %73 = arith.truncf %72 : vector<4x64xf32> to vector<4x64xbf16>
    %c2_37 = arith.constant 2 : index
    %c0_38 = arith.constant 0 : index
    %c0_39 = arith.constant 0 : index
    %74 = vector.load %arg5[%c2_37, %c0_38, %c0_39] : memref<3x64x64xbf16, #tpu.memory_space<vmem>>, vector<1x64x64xbf16>
    %75 = vector.shape_cast %74 : vector<1x64x64xbf16> to vector<64x64xbf16>
    %cst_40 = arith.constant dense<0.000000e+00> : vector<4x64xf32>
    %76 = tpu.matmul %73, %75, %cst_40 {dimension_numbers = #tpu.dot_dimension_numbers<[1], [0], [0], [1], [0, 0, 1, 1], [], []>} : vector<4x64xbf16>, vector<64x64xbf16>, vector<4x64xf32> -> vector<4x64xf32>
    %77 = arith.addf %62, %76 : vector<4x64xf32>
    %c0_41 = arith.constant 0 : index
    %c0_42 = arith.constant 0 : index
    %78 = vector.load %arg6[%c0_41, %c0_42] : memref<1x64xf32, #tpu.memory_space<vmem>>, vector<1x64xf32>
    %79 = vector.broadcast %78 : vector<1x64xf32> to vector<4x64xf32>
    %80 = arith.mulf %77, %79 : vector<4x64xf32>
    %c0_43 = arith.constant 0 : index
    %c0_44 = arith.constant 0 : index
    %81 = vector.load %arg7[%c0_43, %c0_44] : memref<1x64xf32, #tpu.memory_space<vmem>>, vector<1x64xf32>
    %82 = vector.broadcast %81 : vector<1x64xf32> to vector<4x64xf32>
    %83 = arith.addf %80, %82 : vector<4x64xf32>
    %84 = arith.addf %83, %41 : vector<4x64xf32>
    %cst_45 = arith.constant 0.000000e+00 : f32
    %85 = vector.broadcast %cst_45 : f32 to vector<4x64xf32>
    %86 = arith.maximumf %84, %85 : vector<4x64xf32>
    %cst_46 = arith.constant 2.500000e-01 : f32
    %87 = vector.broadcast %cst_46 : f32 to vector<1x4xf32>
    %cst_47 = arith.constant dense<0.000000e+00> : vector<1x64xf32>
    %88 = tpu.matmul %87, %86, %cst_47 {dimension_numbers = #tpu.dot_dimension_numbers<[1], [0], [0], [1], [0, 0, 1, 1], [], []>} : vector<1x4xf32>, vector<4x64xf32>, vector<1x64xf32> -> vector<1x64xf32>
    %c0_48 = arith.constant 0 : index
    %c0_49 = arith.constant 0 : index
    %89 = vector.load %arg8[%c0_48, %c0_49] : memref<64x1xf32, #tpu.memory_space<vmem>>, vector<64x1xf32>
    %cst_50 = arith.constant dense<0.000000e+00> : vector<1x1xf32>
    %90 = tpu.matmul %88, %89, %cst_50 {dimension_numbers = #tpu.dot_dimension_numbers<[1], [0], [0], [1], [0, 0, 1, 1], [], []>} : vector<1x64xf32>, vector<64x1xf32>, vector<1x1xf32> -> vector<1x1xf32>
    %c0_51 = arith.constant 0 : index
    %c0_52 = arith.constant 0 : index
    %91 = vector.load %arg9[%c0_51, %c0_52] : memref<1x1xf32, #tpu.memory_space<vmem>>, vector<1x1xf32>
    %92 = arith.addf %90, %91 : vector<1x1xf32>
    %c0_53 = arith.constant 0 : index
    %c0_54 = arith.constant 0 : index
    %c0_55 = arith.constant 0 : index
    %93 = vector.load %arg10[%c0_53, %c0_54, %c0_55] : memref<1x1x1xf32, #tpu.memory_space<vmem>>, vector<1x1x1xf32>
    %94 = vector.shape_cast %93 : vector<1x1x1xf32> to vector<1x1xf32>
    %95 = vector.shape_cast %92 : vector<1x1xf32> to vector<1x1x1xf32>
    tpu.vector_store %arg10[%c0_53, %c0_54, %c0_55], %95 {strides = array<i32>} : memref<1x1x1xf32, #tpu.memory_space<vmem>>, vector<1x1x1xf32>,
    return
  }
  func.func @transform_0(%arg0: i32) -> (i32, i32, i32) {
    %c0_i32 = arith.constant 0 : i32
    %c0_i32_0 = arith.constant 0 : i32
    %c0_i32_1 = arith.constant 0 : i32
    return %arg0, %c0_i32, %c0_i32_0 : i32, i32, i32
  }
  func.func @transform_1(%arg0: i32) -> (i32, i32, i32) {
    %c0_i32 = arith.constant 0 : i32
    %c0_i32_0 = arith.constant 0 : i32
    %c0_i32_1 = arith.constant 0 : i32
    %c0_i32_2 = arith.constant 0 : i32
    return %c0_i32, %c0_i32_0, %c0_i32_1 : i32, i32, i32
  }
  func.func @transform_2(%arg0: i32) -> (i32, i32) {
    %c0_i32 = arith.constant 0 : i32
    %c0_i32_0 = arith.constant 0 : i32
    %c0_i32_1 = arith.constant 0 : i32
    return %c0_i32, %c0_i32_0 : i32, i32
  }
  func.func @transform_3(%arg0: i32) -> (i32, i32) {
    %c0_i32 = arith.constant 0 : i32
    %c0_i32_0 = arith.constant 0 : i32
    %c0_i32_1 = arith.constant 0 : i32
    return %c0_i32, %c0_i32_0 : i32, i32
  }
  func.func @transform_4(%arg0: i32) -> (i32, i32, i32) {
    %c0_i32 = arith.constant 0 : i32
    %c0_i32_0 = arith.constant 0 : i32
    %c0_i32_1 = arith.constant 0 : i32
    %c0_i32_2 = arith.constant 0 : i32
    return %c0_i32, %c0_i32_0, %c0_i32_1 : i32, i32, i32
  }
  func.func @transform_5(%arg0: i32) -> (i32, i32) {
    %c0_i32 = arith.constant 0 : i32
    %c0_i32_0 = arith.constant 0 : i32
    %c0_i32_1 = arith.constant 0 : i32
    return %c0_i32, %c0_i32_0 : i32, i32
  }
  func.func @transform_6(%arg0: i32) -> (i32, i32) {
    %c0_i32 = arith.constant 0 : i32
    %c0_i32_0 = arith.constant 0 : i32
    %c0_i32_1 = arith.constant 0 : i32
    return %c0_i32, %c0_i32_0 : i32, i32
  }
  func.func @transform_7(%arg0: i32) -> (i32, i32) {
    %c0_i32 = arith.constant 0 : i32
    %c0_i32_0 = arith.constant 0 : i32
    %c0_i32_1 = arith.constant 0 : i32
    return %c0_i32, %c0_i32_0 : i32, i32
  }
  func.func @transform_8(%arg0: i32) -> (i32, i32) {
    %c0_i32 = arith.constant 0 : i32
    %c0_i32_0 = arith.constant 0 : i32
    %c0_i32_1 = arith.constant 0 : i32
    return %c0_i32, %c0_i32_0 : i32, i32
  }
  func.func @transform_9(%arg0: i32) -> (i32, i32, i32) {
    %c0_i32 = arith.constant 0 : i32
    %c0_i32_0 = arith.constant 0 : i32
    %c0_i32_1 = arith.constant 0 : i32
    return %arg0, %c0_i32, %c0_i32_0 : i32, i32, i32
  }
}

</mosaic_0001>

<bundles_post_ra>
// kernel: resnet_forward.4
= control target key start
LH: loop header
LB: loop body
LE: loop exit
PB: predicated region body
PF: predicated region fallthrough
CT: control target
= control target key end

     0   :  { %s397_s15 = smov 0   ;;  %s433_s0 = inlined_call_operand.vmem [shape: f32[2,18,1], index: 0, kind: input, shape index: {}]   ;;  %s434_s1 = inlined_call_operand.vmem [shape: f32[3,1,16], index: 1, kind: input, shape index: {}]   ;;  %s435_s2 = inlined_call_operand.vmem [shape: f32[1,16], index: 2, kind: input, shape index: {}]   ;;  %s436_s3 = inlined_call_operand.vmem [shape: f32[1,16], index: 3, kind: input, shape index: {}]   ;;  %s437_s4 = inlined_call_operand.vmem [shape: f32[2,16,16], index: 4, kind: output, shape index: {}]  }
   0x1 LB: > { %s332_s16 = sadd.s32 4294967295, %s369_s15   ;;  %p336_p0 = scmp.ge.s32.totalorder %s369_s15, 1  ;;  %s369_s15 = sphi %s397_s15, %s14_s15  }
   0x2   : > { %p162_p1 = scmp.lt.s32.totalorder %s369_s15, 3 }
   0x4   : > { %p163_p2 = pnand %p336_p0, %p162_p1 }
   0x5   : > { %p188_p3 = scmp.lt.s32.totalorder (!%p163_p2), %s332_s16, 1 }
   0x6   : > { %166 = sbr.rel (%p163_p2) target bundleno = 153 (0x99), region = 36 }
   0xb   : > { %v371_v0 = vmov 0   ;;  %s439_s16 = smov (!%p188_p3, %s332_s16), 1  ;;  %v358_v7 = vld [vmem:[%s434_s1 + $0x2] ss:$0 sm:$0xff]  ;;  %v359_v9 = vld [vmem:[%s434_s1 + $0x1] ss:$0 sm:$0xff] }
   0xc   : > { %356 = vset.pattern.permute.xlu1 %v371_v0  ;;  %355 = vset.pattern.permute.xlu0 %v371_v0  ;;  %s345_s17 = smul.u32 24, %s439_s16  ;;  %v360_v10 = vld [vmem:[%s434_s1] ss:$0 sm:$0xff]  ;;  %s344_s5 = sshll.u32 %s439_s16, 4  ;;  %vm274_vm0 = vcmask 130048  }
   0xd   : > { %357 = vset.pattern.permute.xlu2 %v371_v0  ;;  %v361_v16 = vld [vmem:[%s435_s2] ss:$0 sm:$0xff]  ;;  %s197_s8 = scalar_lea.vmem %s437_s4, %s344_s5 }
   0xe   : > { %s192_s20 = scalar_lea.vmem %s433_s0, %s345_s17  ;;  %v362_v18 = vld [vmem:[%s436_s3] ss:$0 sm:$0xff] }
   0xf   : > { %v218_v1 = vld [vmem:[%s192_s20 + $0x1] sm:$0xff]  ;;  %v219_v4 = vld [vmem:[%s192_s20 + $0x9] sm:$0xff] }
  0x10   : > { %v198_v2 = vld [vmem:[%s192_s20] sm:$0xff]  ;;  %224 = vperm.xlu1 %356, %v218_v1   ;;  %v199_v5 = vld [vmem:[%s192_s20 + $0x8] sm:$0xff] }
  0x11   : > { %203 = vperm.xlu0 %355, %v198_v2   ;;  %v239_v3 = vld [vmem:[%s192_s20 + $0x2] sm:$0xff]  ;;  %v240_v6 = vld [vmem:[%s192_s20 + $0xa] sm:$0xff] }
  0x12   : > { %245 = vperm.xlu2 %357, %v239_v3  }
  0x18   : > { %229 = vperm.xlu1 %356, %v219_v4  }
  0x19   : > { %208 = vperm.xlu0 %355, %v199_v5  }
  0x1a   : > { %250 = vperm.xlu2 %357, %v240_v6  }
  0x6c   : > { %v246_v8 = vpop.permute.xlu2 %245 }
  0x6d   : > { %v256_v13 = vmul.f32 %v358_v7, %v246_v8 }
  0x74   : > { %v251_v21 = vpop.permute.xlu2 %250 }
  0x75   : > { %v257_v28 = vmul.f32 %v358_v7, %v251_v21 }
  0x82   : > { %v225_v11 = vpop.permute.xlu1 %224 }
  0x83   : > { %v204_v12 = vpop.permute.xlu0 %203  ;;  %v235_v14 = vmul.f32 %v359_v9, %v225_v11 }
  0x84   : > { %v214_v15 = vmul.f32 %v360_v10, %v204_v12 }
  0x86   : > { %v237_v17 = vadd.f32 %v235_v14, %v214_v15 }
  0x88   : > { %v258_v19 = vadd.f32 %v256_v13, %v237_v17 }
  0x8a   : > { %v264_v20 = vmul.f32 %v361_v16, %v258_v19  ;;  %v230_v22 = vpop.permute.xlu1 %229 }
  0x8b   : > { %v209_v23 = vpop.permute.xlu0 %208  ;;  %v236_v25 = vmul.f32 %v359_v9, %v230_v22 }
  0x8c   : > { %v270_v24 = vadd.f32 %v362_v18, %v264_v20  ;;  %v215_v26 = vmul.f32 %v360_v10, %v209_v23 }
  0x8e   : > { %v272_v27 = vmax.f32 %v270_v24, 0.0  ;;  %v238_v29 = vadd.f32 %v236_v25, %v215_v26 }
  0x90   : > { %275 = vst.msk [vmem:[%s197_s8] sm:$0xff] %vm274_vm0, %v272_v27  ;;  %v259_v30 = vadd.f32 %v257_v28, %v238_v29 }
  0x92   : > { %v265_v31 = vmul.f32 %v361_v16, %v259_v30 }
  0x94   : > { %v271_v32 = vadd.f32 %v362_v18, %v265_v31 }
  0x96   : > { %v273_v33 = vmax.f32 %v271_v32, 0.0 }
  0x98   : > { %276 = vst.msk [vmem:[%s197_s8 + $0x8] sm:$0xff] %vm274_vm0, %v273_v33 }
  0x99 PF: > { %s14_s15 = sadd.s32 1, %s369_s15  }
  0x9a   : > { %p11_p4 = scmp.ge.s32.totalorder %s14_s15, 4  }
  0x9c   :  { %13 = sbr.rel (!%p11_p4) target bundleno = 1 (0x1), region = 68 }

// kernel: resnet_forward.6
= control target key start
LH: loop header
LB: loop body
LE: loop exit
PB: predicated region body
PF: predicated region fallthrough
CT: control target
= control target key end

     0   :  { %s780_s24 = smov 0   ;;  %s848_s0 = inlined_call_operand.vmem [shape: f32[2,18,16], index: 0, kind: input, shape index: {}]   ;;  %s849_s1 = inlined_call_operand.vmem [shape: bf16[3,16,64], index: 1, kind: input, shape index: {}]   ;;  %s850_s2 = inlined_call_operand.vmem [shape: f32[1,64], index: 2, kind: input, shape index: {}]   ;;  %s851_s3 = inlined_call_operand.vmem [shape: f32[1,64], index: 3, kind: input, shape index: {}]   ;;  %s852_s4 = inlined_call_operand.vmem [shape: bf16[3,32,32], index: 4, kind: input, shape index: {}]   ;;  %s853_s5 = inlined_call_operand.vmem [shape: f32[1,32], index: 5, kind: input, shape index: {}]   ;;  %s854_s6 = inlined_call_operand.vmem [shape: f32[1,32], index: 6, kind: input, shape index: {}]   ;;  %s855_s7 = inlined_call_operand.vmem [shape: f32[2,8,32], index: 7, kind: output, shape index: {}]  }
   0x1 LB: > { %s637_s25 = sadd.s32 4294967295, %s736_s24   ;;  %p641_p0 = scmp.ge.s32.totalorder %s736_s24, 1  ;;  %s736_s24 = sphi %s780_s24, %s17_s24  }
   0x2   : > { %p237_p1 = scmp.lt.s32.totalorder %s736_s24, 3 }
   0x4   : > { %p238_p2 = pnand %p641_p0, %p237_p1 }
   0x5   : > { %p268_p3 = scmp.lt.s32.totalorder (!%p238_p2), %s637_s25, 1  ;;  %s739_s21 = smov (!%p238_p2), 96  }
   0x6   : > { %241 = sbr.rel (%p238_p2) target bundleno = 581 (0x245), region = 48 }
   0xb   : > { %v707_v0 = vld [vmem:[%s849_s1 + $0x8] sm:$0xff]  ;;  %v706_v1 = vld [vmem:[%s849_s1] sm:$0xff]  ;;  %v708_v2 = vld [vmem:[%s849_s1 + $0x10] sm:$0xff]  ;;  %s857_s25 = smov (!%p268_p3, %s637_s25), 1  ;;  %vm295_vm0 = vcmask 130048   ;;  %v367_v14 = vlaneseq  ;;  %v738_v26 = vmov 0.0  }
   0xc   : > { %306 = vmatpush.bf16.msra.mxu0 %v707_v0  ;;  %329 = vmatpush.bf16.msra.mxu1 %v706_v1  ;;  %s715_s9 = smul.u32 24, %s857_s25  ;;  %v712_v28 = vld [vmem:[%s852_s4 + $0x18] sm:$0xff]  ;;  %v711_v29 = vld [vmem:[%s852_s4 + $0x10] sm:$0xff]  ;;  %v726_v30 = vld [vmem:[%s850_s2] ss:$0 sm:$0xff]  ;;  %vm413_vm4 = vcmask 64512  }
   0xd   : > { %358 = vmatpush.bf16.msra.mxu2 %v708_v2  ;;  %v368_v16 = vshrl.u32 %v367_v14, 7  ;;  %v370_v19 = vand.u32 127, %v367_v14  ;;  %v727_v33 = vld [vmem:[%s851_s3] ss:$0 sm:$0xff]  ;;  %vm460_vm5 = vcmask 261120   ;;  %v710_v41 = vld [vmem:[%s852_s4 + $0x8] sm:$0xff] }
   0xe   : > { %s272_s12 = scalar_lea.vmem %s848_s0, %s715_s9  ;;  %v714_v42 = vld [vmem:[%s852_s4 + $0x28] sm:$0xff]  ;;  %v709_v43 = vld [vmem:[%s852_s4] sm:$0xff]  ;;  %s643_s13 = sshll.u32 %s857_s25, 3 }
   0xf   : > { %v283_v3 = vld [vmem:[%s272_s12 + $0x1] sm:$0xff]  ;;  %v284_v4 = vld [vmem:[%s272_s12 + $0x9] sm:$0xff]  ;;  %v371_v20 = vmul.u32 2, %v368_v16  ;;  %v409_v31 = vadd.s32 4294967295, %v368_v16  ;;  %v505_v32 = vadd.s32 1, %v368_v16  ;;  %s276_s16 = scalar_lea.vmem %s855_s7, %s643_s13 }
  0x10   : > { %v278_v5 = vld [vmem:[%s272_s12] sm:$0xff]  ;;  %v285_v6 = vpack.c.bf16 %v284_v4, %v283_v3  ;;  %v279_v7 = vld [vmem:[%s272_s12 + $0x8] sm:$0xff]  ;;  %470 = vmatpush.bf16.msrb.mxu0 %v712_v28  ;;  %498 = vmatpush.bf16.msrb.mxu1 %v710_v41 }
  0x11   : > { %v336_v8 = vld [vmem:[%s272_s12 + $0x2] sm:$0xff]  ;;  %v337_v9 = vld [vmem:[%s272_s12 + $0xa] sm:$0xff]  ;;  %v280_v10 = vpack.c.bf16 %v279_v7, %v278_v5  ;;  %vm372_vm1 = vcmp.eq.s32.totalorder %v370_v19, %v371_v20  ;;  %vm410_vm2 = vcmp.eq.s32.totalorder %v370_v19, %v409_v31  ;;  %vm506_vm3 = vcmp.eq.s32.totalorder %v370_v19, %v505_v32  ;;  %v728_v53 = vld [vmem:[%s853_s5] ss:$0 sm:$0xff] }
  0x12   : > { %v338_v11 = vpack.c.bf16 %v337_v9, %v336_v8  ;;  %650 = vmatmul.msk.bf16.vlgmr.msra.gmra.mxu0 %vm295_vm0, %v285_v6  ;;  %v663_v27 = vsel %vm372_vm1, 1.0, %v738_v26  ;;  %v665_v38 = vsel %vm410_vm2, 1.0, %v738_v26  ;;  %v689_v39 = vsel %vm506_vm3, 1.0, %v738_v26  ;;  %v713_v44 = vld [vmem:[%s852_s4 + $0x20] sm:$0xff] }
  0x13   : > { %655 = vmatmul.msk.bf16.vlgmr.msra.gmra.mxu1 %vm295_vm0, %v280_v10  ;;  %v729_v56 = vld [vmem:[%s854_s6] ss:$0 sm:$0xff] }
  0x14   : > { %662 = vmatmul.msk.bf16.vlgmr.msra.gmra.mxu2 %vm295_vm0, %v338_v11  ;;  %471 = vmatpush.bf16.msrb.mxu0 %v711_v29 }
  0x15   : > { %499 = vmatpush.bf16.msrb.mxu1 %v709_v43 }
  0x8f   : > { %v308_v12 = vpop.f32.mrf.mxu0 }
  0x90   : > { %v331_v13 = vpop.f32.mrf.mxu1 }
  0x91   : > { %v332_v21 = vadd.f32 %v331_v13, %v308_v12 }
  0x97   : > { %v360_v15 = vpop.f32.mrf.mxu2  ;;  %v310_v17 = vpop.f32.mrf.mxu0 }
  0x98   : > { %v333_v18 = vpop.f32.mrf.mxu1  ;;  %v365_v25 = vadd.f32 %v360_v15, %v332_v21 }
  0x99   : > { %v334_v22 = vadd.f32 %v333_v18, %v310_v17 }
  0x9f   : > { %v362_v23 = vpop.f32.mrf.mxu2 }
  0xa0   : > { %v366_v24 = vadd.f32 %v362_v23, %v334_v22 }
  0xa2   : > { %392 = vmatpush.msra.mxu3 %v366_v24 }
  0xa4   : > { %393 = vmatpush.msra.mxu3 %v365_v25 }
  0xa5   : > { %664 = vmatmul.msk.f32.vlgmr.msra.gmra.mxu3 %vm295_vm0, %v663_v27 }
 0x128   : > { %v395_v34 = vpop.f32.mrf.mxu3 }
 0x129   : > { %v402_v35 = vmul.f32 %v726_v30, %v395_v34 }
 0x12b   : > { %v407_v36 = vadd.f32 %v727_v33, %v402_v35 }
 0x12d   : > { %v408_v37 = vmax.f32 %v407_v36, 0.0  ;;  %578 = vrot.lane.b32.xlu0 %v407_v36, %s739_s21 }
 0x12f   : > { %432 = vmatpush.msrb.mxu3 %v408_v37  ;;  %527 = vmatpush.msrb.mxu2 %v408_v37  ;;  %v442_v40 = vpack.c.bf16 %v408_v37, %v408_v37 }
 0x130   : > { %666 = vmatmul.msk.f32.vlgmr.msrb.gmra.mxu3 %vm413_vm4, %v665_v38  ;;  %690 = vmatmul.msk.f32.vlgmr.msrb.gmra.mxu2 %vm413_vm4, %v689_v39 }
 0x131   : > { %679 = vmatmul.msk.bf16.vlgmr.msrb.gmra.mxu0 %vm460_vm5, %v442_v40  ;;  %559 = vmatpush.bf16.msra.mxu3 %v714_v42 }
 0x135   : > { %560 = vmatpush.bf16.msra.mxu3 %v713_v44 }
 0x19f   : > { %v579_v60 = vpop.permute.xlu0 %578 }
 0x1ae   : > { %v473_v45 = vpop.f32.mrf.mxu0 }
 0x1b3   : > { %v434_v46 = vpop.f32.mrf.mxu3  ;;  %v529_v47 = vpop.f32.mrf.mxu2 }
 0x1b4   : > { %v437_v48 = vpack.c.bf16 %v434_v46, %v434_v46  ;;  %v532_v49 = vpack.c.bf16 %v529_v47, %v529_v47 }
 0x1b6   : > { %v475_v50 = vpop.f32.mrf.mxu0  ;;  %688 = vmatmul.msk.bf16.vlgmr.msrb.gmra.mxu1 %vm460_vm5, %v437_v48  ;;  %703 = vmatmul.msk.bf16.vlgmr.msra.gmra.mxu3 %vm460_vm5, %v532_v49 }
 0x233   : > { %v501_v51 = vpop.f32.mrf.mxu1 }
 0x234   : > { %v502_v52 = vadd.f32 %v501_v51, %v473_v45 }
 0x239   : > { %v562_v54 = vpop.f32.mrf.mxu3 }
 0x23a   : > { %v566_v55 = vadd.f32 %v562_v54, %v502_v52 }
 0x23b   : > { %v503_v57 = vpop.f32.mrf.mxu1 }
 0x23c   : > { %v571_v58 = vmul.f32 %v728_v53, %v566_v55 }
 0x23e   : > { %v576_v59 = vadd.f32 %v729_v56, %v571_v58 }
 0x240   : > { %v581_v61 = vadd.f32 %v579_v60, %v576_v59 }
 0x241   : > { %v564_v62 = vpop.f32.mrf.mxu3 }
 0x242   : > { %v582_v63 = vmax.f32 %v581_v61, 0.0 }
 0x244   : > { %583 = vst.msk [vmem:[%s276_s16] sm:$0xff] %vm460_vm5, %v582_v63 }
 0x245 PF: > { %s17_s24 = sadd.s32 1, %s736_s24  }
 0x246   : > { %p14_p4 = scmp.ge.s32.totalorder %s17_s24, 4  }
 0x248   :  { %16 = sbr.rel (!%p14_p4) target bundleno = 1 (0x1), region = 82 }

// kernel: resnet_forward.5
= control target key start
LH: loop header
LB: loop body
LE: loop exit
PB: predicated region body
PF: predicated region fallthrough
CT: control target
= control target key end

     0   :  { %s743_s24 = smov 0   ;;  %s814_s0 = inlined_call_operand.vmem [shape: f32[2,18,16], index: 0, kind: input, shape index: {}]   ;;  %s815_s1 = inlined_call_operand.vmem [shape: bf16[3,16,16], index: 1, kind: input, shape index: {}]   ;;  %s816_s2 = inlined_call_operand.vmem [shape: f32[1,16], index: 2, kind: input, shape index: {}]   ;;  %s817_s3 = inlined_call_operand.vmem [shape: f32[1,16], index: 3, kind: input, shape index: {}]   ;;  %s818_s4 = inlined_call_operand.vmem [shape: bf16[3,16,16], index: 4, kind: input, shape index: {}]   ;;  %s819_s5 = inlined_call_operand.vmem [shape: f32[1,16], index: 5, kind: input, shape index: {}]   ;;  %s820_s6 = inlined_call_operand.vmem [shape: f32[1,16], index: 6, kind: input, shape index: {}]   ;;  %s821_s7 = inlined_call_operand.vmem [shape: f32[2,16,16], index: 7, kind: output, shape index: {}]  }
   0x1 LB: > { %s617_s25 = sadd.s32 4294967295, %s700_s24   ;;  %p621_p0 = scmp.ge.s32.totalorder %s700_s24, 1  ;;  %s700_s24 = sphi %s743_s24, %s17_s24  }
   0x2   : > { %p237_p1 = scmp.lt.s32.totalorder %s700_s24, 3 }
   0x4   : > { %p238_p2 = pnand %p621_p0, %p237_p1 }
   0x5   : > { %p269_p3 = scmp.lt.s32.totalorder (!%p238_p2), %s617_s25, 1 }
   0x6   : > { %241 = sbr.rel (%p238_p2) target bundleno = 465 (0x1d1), region = 48 }
   0xb   : > { %v675_v0 = vld [vmem:[%s815_s1 + $0x8] sm:$0xff]  ;;  %v674_v1 = vld [vmem:[%s815_s1] sm:$0xff]  ;;  %v676_v2 = vld [vmem:[%s815_s1 + $0x10] sm:$0xff]  ;;  %s823_s25 = smov (!%p269_p3, %s617_s25), 1  ;;  %vm297_vm0 = vcmask 130048   ;;  %v383_v17 = vlaneseq  ;;  %v702_v38 = vmov 0.0  }
   0xc   : > { %308 = vmatpush.bf16.msra.mxu0 %v675_v0  ;;  %331 = vmatpush.bf16.msra.mxu1 %v674_v1  ;;  %s680_s9 = smul.u32 24, %s823_s25  ;;  %v678_v12 = vld [vmem:[%s818_s4 + $0x8] sm:$0xff]  ;;  %v690_v19 = vld [vmem:[%s816_s2] ss:$0 sm:$0xff]  ;;  %v679_v46 = vld [vmem:[%s818_s4 + $0x10] sm:$0xff]  ;;  %s673_s29 = sshll.u32 %s823_s25, 4 }
   0xd   : > { %360 = vmatpush.bf16.msra.mxu2 %v676_v2  ;;  %v384_v22 = vshrl.u32 %v383_v17, 7  ;;  %v691_v25 = vld [vmem:[%s817_s3] ss:$0 sm:$0xff]  ;;  %v387_v28 = vand.u32 127, %v383_v17 }
   0xe   : > { %s273_s12 = scalar_lea.vmem %s814_s0, %s680_s9  ;;  %v677_v45 = vld [vmem:[%s818_s4] sm:$0xff]  ;;  %s278_s9 = scalar_lea.vmem %s821_s7, %s673_s29 }
   0xf   : > { %v766_v3 = vld [vmem:[%s273_s12 + $0x1] sm:$0xff]  ;;  %v768_v4 = vld [vmem:[%s273_s12 + $0x9] sm:$0xff]  ;;  %v388_v29 = vadd.s32 4294967295, %v384_v22  ;;  %v478_v32 = vadd.s32 1, %v384_v22  ;;  %v385_v34 = vadd.s32 8, %v384_v22 }
  0x10   : > { %v280_v5 = vld [vmem:[%s273_s12] sm:$0xff]  ;;  %v287_v6 = vpack.c.bf16 %v768_v4, %v766_v3  ;;  %v281_v7 = vld [vmem:[%s273_s12 + $0x8] sm:$0xff]  ;;  %448 = vmatpush.bf16.msrb.mxu0 %v678_v12  ;;  %471 = vmatpush.bf16.msrb.mxu1 %v677_v45 }
  0x11   : > { %v338_v8 = vld [vmem:[%s273_s12 + $0x2] sm:$0xff]  ;;  %v339_v9 = vld [vmem:[%s273_s12 + $0xa] sm:$0xff]  ;;  %v282_v10 = vpack.c.bf16 %v281_v7, %v280_v5  ;;  %vm390_vm1 = vcmp.eq.s32.totalorder %v387_v28, %v388_v29  ;;  %vm480_vm2 = vcmp.eq.s32.totalorder %v387_v28, %v478_v32  ;;  %v389_v41 = vadd.s32 4294967295, %v385_v34  ;;  %v692_v56 = vld [vmem:[%s819_s5] ss:$0 sm:$0xff] }
  0x12   : > { %v340_v11 = vpack.c.bf16 %v339_v9, %v338_v8  ;;  %631 = vmatmul.msk.bf16.vlgmr.msra.gmra.mxu0 %vm297_vm0, %v287_v6  ;;  %v644_v39 = vsel %vm390_vm1, 1.0, %v702_v38  ;;  %v660_v40 = vsel %vm480_vm2, 1.0, %v702_v38  ;;  %v479_v42 = vadd.s32 1, %v385_v34  ;;  %v693_v59 = vld [vmem:[%s820_s6] ss:$0 sm:$0xff] }
  0x13   : > { %636 = vmatmul.msk.bf16.vlgmr.msra.gmra.mxu1 %vm297_vm0, %v282_v10  ;;  %vm391_vm3 = vcmp.eq.s32.totalorder %v387_v28, %v389_v41 }
  0x14   : > { %643 = vmatmul.msk.bf16.vlgmr.msra.gmra.mxu2 %vm297_vm0, %v340_v11  ;;  %vm481_vm4 = vcmp.eq.s32.totalorder %v387_v28, %v479_v42  ;;  %v645_v43 = vsel %vm391_vm3, 1.0, %v702_v38 }
  0x15   : > { %v661_v44 = vsel %vm481_vm4, 1.0, %v702_v38 }
  0x8f   : > { %v310_v13 = vpop.f32.mrf.mxu0 }
  0x90   : > { %v333_v14 = vpop.f32.mrf.mxu1 }
  0x91   : > { %v334_v15 = vadd.f32 %v333_v14, %v310_v13 }
  0x97   : > { %v362_v16 = vpop.f32.mrf.mxu2  ;;  %v312_v20 = vpop.f32.mrf.mxu0 }
  0x98   : > { %v367_v18 = vadd.f32 %v362_v16, %v334_v15  ;;  %v335_v21 = vpop.f32.mrf.mxu1 }
  0x99   : > { %v336_v24 = vadd.f32 %v335_v21, %v312_v20 }
  0x9a   : > { %v373_v23 = vmul.f32 %v690_v19, %v367_v18 }
  0x9c   : > { %v379_v31 = vadd.f32 %v691_v25, %v373_v23 }
  0x9e   : > { %v381_v36 = vmax.f32 %v379_v31, 0.0 }
  0x9f   : > { %v364_v26 = vpop.f32.mrf.mxu2 }
  0xa0   : > { %v368_v27 = vadd.f32 %v364_v26, %v336_v24 }
  0xa2   : > { %v374_v30 = vmul.f32 %v690_v19, %v368_v27 }
  0xa4   : > { %v380_v33 = vadd.f32 %v691_v25, %v374_v30 }
  0xa6   : > { %v382_v35 = vmax.f32 %v380_v33, 0.0 }
  0xa8   : > { %416 = vmatpush.msra.mxu3 %v382_v35  ;;  %506 = vmatpush.msrb.mxu2 %v382_v35  ;;  %v428_v37 = vpack.c.bf16 %v382_v35, %v381_v36 }
  0xaa   : > { %417 = vmatpush.msra.mxu3 %v381_v36  ;;  %654 = vmatmul.msk.bf16.vlgmr.msrb.gmra.mxu0 %vm297_vm0, %v428_v37 }
  0xab   : > { %507 = vmatpush.msrb.mxu2 %v381_v36  ;;  %646 = vmatmul.msk.f32.vlgmr.msra.gmra.mxu3 %vm297_vm0, %v644_v39 }
  0xac   : > { %662 = vmatmul.msk.f32.vlgmr.msrb.gmra.mxu2 %vm297_vm0, %v660_v40  ;;  %535 = vmatpush.bf16.msrb.mxu3 %v679_v46 }
  0xb3   : > { %647 = vmatmul.msk.f32.gmra.mxu3 %vm297_vm0, %v645_v43 }
  0xb4   : > { %663 = vmatmul.msk.f32.gmra.mxu2 %vm297_vm0, %v661_v44 }
 0x127   : > { %v450_v54 = vpop.f32.mrf.mxu0 }
 0x12e   : > { %v419_v47 = vpop.f32.mrf.mxu3 }
 0x12f   : > { %v509_v48 = vpop.f32.mrf.mxu2  ;;  %v452_v63 = vpop.f32.mrf.mxu0 }
 0x136   : > { %v422_v49 = vpop.f32.mrf.mxu3 }
 0x137   : > { %v425_v50 = vpack.c.bf16 %v422_v49, %v419_v47  ;;  %v512_v51 = vpop.f32.mrf.mxu2 }
 0x138   : > { %v515_v52 = vpack.c.bf16 %v512_v51, %v509_v48 }
 0x139   : > { %659 = vmatmul.msk.bf16.vlgmr.msrb.gmra.mxu1 %vm297_vm0, %v425_v50 }
 0x13a   : > { %670 = vmatmul.msk.bf16.vlgmr.msrb.gmra.mxu3 %vm297_vm0, %v515_v52 }
 0x1b6   : > { %v473_v53 = vpop.f32.mrf.mxu1 }
 0x1b7   : > { %v474_v55 = vadd.f32 %v473_v53, %v450_v54 }
 0x1bd   : > { %v537_v57 = vpop.f32.mrf.mxu3 }
 0x1be   : > { %v542_v58 = vadd.f32 %v537_v57, %v474_v55  ;;  %v475_v61 = vpop.f32.mrf.mxu1 }
 0x1bf   : > { %v476_v1 = vadd.f32 %v475_v61, %v452_v63 }
 0x1c0   : > { %v548_v60 = vmul.f32 %v692_v56, %v542_v58 }
 0x1c2   : > { %v554_v62 = vadd.f32 %v693_v59, %v548_v60 }
 0x1c4   : > { %v556_v0 = vadd.f32 %v554_v62, %v766_v3 }
 0x1c5   : > { %v539_v2 = vpop.f32.mrf.mxu3 }
 0x1c6   : > { %v558_v5 = vmax.f32 %v556_v0, 0.0  ;;  %v543_v6 = vadd.f32 %v539_v2, %v476_v1 }
 0x1c8   : > { %560 = vst.msk [vmem:[%s278_s9] sm:$0xff] %vm297_vm0, %v558_v5  ;;  %v549_v7 = vmul.f32 %v692_v56, %v543_v6 }
 0x1ca   : > { %v555_v8 = vadd.f32 %v693_v59, %v549_v7 }
 0x1cc   : > { %v557_v9 = vadd.f32 %v555_v8, %v768_v4 }
 0x1ce   : > { %v559_v10 = vmax.f32 %v557_v9, 0.0 }
 0x1d0   : > { %561 = vst.msk [vmem:[%s278_s9 + $0x8] sm:$0xff] %vm297_vm0, %v559_v10 }
 0x1d1 PF: > { %s17_s24 = sadd.s32 1, %s700_s24  }
 0x1d2   : > { %p14_p4 = scmp.ge.s32.totalorder %s17_s24, 4  }
 0x1d4   :  { %16 = sbr.rel (!%p14_p4) target bundleno = 1 (0x1), region = 82 }

// kernel: resnet_forward.7
= control target key start
LH: loop header
LB: loop body
LE: loop exit
PB: predicated region body
PF: predicated region fallthrough
CT: control target
= control target key end

     0   :  { %s1381_s0 = inlined_call_operand.vmem [shape: f32[2,10,32], index: 0, kind: input, shape index: {}]   ;;  %s1382_s1 = inlined_call_operand.vmem [shape: bf16[3,32,128], index: 1, kind: input, shape index: {}]   ;;  %s1383_s2 = inlined_call_operand.hbm [shape: f32[1,128], index: 2, kind: input, shape index: {}]   ;;  %s1384_s3 = inlined_call_operand.hbm [shape: f32[1,128], index: 3, kind: input, shape index: {}]   ;;  %s1385_s4 = inlined_call_operand.vmem [shape: bf16[3,64,64], index: 4, kind: input, shape index: {}]   ;;  %s1386_s5 = inlined_call_operand.hbm [shape: f32[1,64], index: 5, kind: input, shape index: {}]   ;;  %s1387_s6 = inlined_call_operand.vmem [shape: f32[1,64], index: 6, kind: input, shape index: {}]   ;;  %s1388_s7 = inlined_call_operand.vmem [shape: f32[64,1], index: 7, kind: input, shape index: {}]   ;;  %s1389_s8 = inlined_call_operand.<no memory space> [shape: f32[1,1], index: 8, kind: input, shape index: {}]   ;;  %s1390_s9 = inlined_call_operand.vmem [shape: f32[2,1,1], index: 9, kind: output, shape index: {}]  }
   0x1   :  { %v14_v0 = vstv %s1389_s8 }
   0x2   :  { %15 = vst [vmem:[#allocation2] sm:$0x1] %v14_v0 }
   0x3   :  { %16 = vsyncpa [#allocation4], 0 }
   0x4   :  { %17 = vsyncpa [#allocation6], 0  ;;  %s1247_s11 = smov 0  }
   0x5 LB: > { %s275_s14 = sshll.u32 %s1384_s3, 4  ;;  %s889_s15 = sadd.s32 4294967295, %s1186_s11   ;;  %s1186_s11 = sphi %s1247_s11, %s23_s11   ;;  %s276_s14 = int_to_ptr.hbm [resolvable:$true] %s275_s14 }
   0x6   : > { %p891_p0 = scmp.ge.s32.totalorder %s1186_s11, 1  ;;  %p248_p1 = scmp.lt.s32.totalorder %s1186_s11, 3 }
   0x7   : > { %p1058_p2 = scmp.eq.s32.totalorder %s889_s15, 0  ;;  %s1188_s16 = smov [#allocation5]  }
   0x8   : > { %p1258_p3 = pnand %p891_p0, %p248_p1  ;;  %s277_s17 = sshll.u32 %s1188_s16, 4  ;;  %s278_s17 = int_to_ptr.vmem [resolvable:$true] %s277_s17 }
   0x9   : > { %s263_s20 = sshll.u32 %s1383_s2, 4  ;;  %s290_s23 = sshll.u32 %s1386_s5, 4  ;;  %s264_s20 = int_to_ptr.hbm [resolvable:$true] %s263_s20  ;;  %s291_s23 = int_to_ptr.hbm [resolvable:$true] %s290_s23 }
   0xa   : > { %p1048_p4 = pneg %p1258_p3  ;;  %s1189_s24 = smov [#allocation3]  }
   0xb   : > { %s265_s25 = sshll.u32 %s1189_s24, 4  ;;  %s1190_s26 = smov [#allocation7]   ;;  %s266_s25 = int_to_ptr.vmem [resolvable:$true] %s265_s25 }
   0xc   : > { %p1049_p5 = pnand %p1058_p2, %p1048_p4  ;;  %s292_s27 = sshll.u32 %s1190_s26, 4  ;;  %s293_s27 = int_to_ptr.vmem [resolvable:$true] %s292_s27 }
   0xd   : > { %322 = sbr.rel (%p1258_p3) target bundleno = 851 (0x353), region = 56 }
   0xe   : > { %1054 = dma.hbm_to_vmem [thread:$0]  (!%p1049_p5), %s276_s14, 16, %s278_s17, [#allocation6]  }
   0xf   : > { %1051 = dma.hbm_to_vmem [thread:$0]  (!%p1049_p5), %s264_s20, 16, %s266_s25, [#allocation4]  }
  0x10   : > { %1057 = dma.hbm_to_vmem [thread:$0]  (!%p1049_p5), %s291_s23, 16, %s293_s27, [#allocation6]  }
  0x12   : > { %1177 = dma.done.wait (%p1058_p2), [#allocation4], 16  }
  0x13   : > { %1179 = vsyncadd (%p1058_p2), [#allocation4], 4294967280 }
  0x14   : > { %1181 = dma.done.wait (%p1058_p2), [#allocation6], 32  }
  0x15   : > { %1183 = vsyncadd (%p1058_p2), [#allocation6], 4294967264  ;;  %p367_p6 = scmp.lt.s32.totalorder %s889_s15, 1  ;;  %v1021_v1 = vld [vmem:[%s1382_s1 + $0x18] sm:$0xff]  ;;  %v1019_v2 = vld [vmem:[%s1382_s1 + $0x8] sm:$0xff]  ;;  %vm401_vm0 = vcmask 261120   ;;  %v482_v15 = vlaneseq }
  0x16   : > { %v1023_v3 = vld [vmem:[%s1382_s1 + $0x28] sm:$0xff]  ;;  %v1020_v4 = vld [vmem:[%s1382_s1 + $0x10] sm:$0xff]  ;;  %v1018_v5 = vld [vmem:[%s1382_s1] sm:$0xff]  ;;  %411 = vmatpush.bf16.msra.mxu0 %v1021_v1  ;;  %439 = vmatpush.bf16.msra.mxu1 %v1019_v2  ;;  %v1191_v26 = vmov 0.0   ;;  %vm490_vm2 = vcmask 64512   ;;  %vm533_vm4 = vcmask 1043456  }
  0x17   : > { %s1393_s15 = smov (!%p367_p6, %s889_s15), 1  ;;  %v1022_v6 = vld [vmem:[%s1382_s1 + $0x20] sm:$0xff]  ;;  %474 = vmatpush.bf16.msra.mxu2 %v1023_v3  ;;  %v1031_v13 = vld [vmem:[%s1385_s4 + $0x38] sm:$0xff]  ;;  %v1030_v14 = vld [vmem:[%s1385_s4 + $0x30] sm:$0xff]  ;;  %v483_v16 = vshrl.u32 %v482_v15, 7  ;;  %v485_v19 = vand.u32 127, %v482_v15 }
  0x18   : > { %s1017_s28 = sshll.u32 %s1393_s15, 4  ;;  %v1029_v29 = vld [vmem:[%s1385_s4 + $0x28] sm:$0xff]  ;;  %v1028_v30 = vld [vmem:[%s1385_s4 + $0x20] sm:$0xff]  ;;  %s1192_s12 = smov 64   ;;  %vm529_vm5 = vcmask 31744   ;;  %vm600_vm6 = vcmask 523264  }
  0x19   : > { %s371_s10 = scalar_lea.vmem %s1381_s0, %s1017_s28  ;;  %v486_v20 = vmul.u32 2, %v483_v16  ;;  %v1078_v31 = vld [vmem:[#allocation3] ss:$0 sm:$0xff]  ;;  %v525_v32 = vadd.s32 4294967295, %v483_v16  ;;  %v1079_v33 = vld [vmem:[#allocation5] ss:$0 sm:$0xff]  ;;  %s374_s29 = scalar_lea.vmem %s1390_s9, %s1393_s15 }
  0x1a   : > { %v382_v7 = vld [vmem:[%s371_s10 + $0x1] sm:$0xff]  ;;  %412 = vmatpush.bf16.msra.mxu0 %v1020_v4  ;;  %440 = vmatpush.bf16.msra.mxu1 %v1018_v5  ;;  %v657_v39 = vadd.s32 1, %v483_v16  ;;  %v1027_v42 = vld [vmem:[%s1385_s4 + $0x18] sm:$0xff]  ;;  %v1026_v43 = vld [vmem:[%s1385_s4 + $0x10] sm:$0xff]  ;;  %vm809_vm8 = vcmask 0  }
  0x1b   : > { %v376_v8 = vld [vmem:[%s371_s10] sm:$0xff]  ;;  %v383_v10 = vpack.c.bf16 %v382_v7, %v382_v7  ;;  %475 = vmatpush.bf16.msra.mxu2 %v1022_v6  ;;  %vm487_vm1 = vcmp.eq.s32.totalorder %v485_v19, %v486_v20  ;;  %vm526_vm3 = vcmp.eq.s32.totalorder %v485_v19, %v525_v32  ;;  %v1025_v44 = vld [vmem:[%s1385_s4 + $0x8] sm:$0xff]  ;;  %v1035_v45 = vld [vmem:[%s1385_s4 + $0x58] sm:$0xff] }
  0x1c   : > { %v446_v9 = vld [vmem:[%s371_s10 + $0x2] sm:$0xff]  ;;  %v377_v11 = vpack.c.bf16 %v376_v8, %v376_v8  ;;  %v937_v27 = vsel %vm487_vm1, 1.0, %v1191_v26  ;;  %v939_v38 = vsel %vm526_vm3, 1.0, %v1191_v26  ;;  %vm658_vm7 = vcmp.eq.s32.totalorder %v485_v19, %v657_v39  ;;  %v1034_v47 = vld [vmem:[%s1385_s4 + $0x50] sm:$0xff]  ;;  %v784_v56 = vld [vmem:[%s1388_s7 + $0x38] sm:$0xff] }
  0x1d   : > { %v447_v12 = vpack.c.bf16 %v446_v9, %v446_v9  ;;  %914 = vmatmul.msk.bf16.vlgmr.msra.gmra.mxu0 %vm401_vm0, %v383_v10  ;;  %v984_v41 = vsel %vm658_vm7, 1.0, %v1191_v26  ;;  %v1024_v46 = vld [vmem:[%s1385_s4] sm:$0xff]  ;;  %v1033_v48 = vld [vmem:[%s1385_s4 + $0x48] sm:$0xff]  ;;  %v783_v57 = vld [vmem:[%s1388_s7 + $0x30] sm:$0xff] }
  0x1e   : > { %923 = vmatmul.msk.bf16.vlgmr.msra.gmra.mxu1 %vm401_vm0, %v377_v11  ;;  %608 = vmatpush.bf16.msrb.mxu0 %v1031_v13  ;;  %v1032_v49 = vld [vmem:[%s1385_s4 + $0x40] sm:$0xff]  ;;  %v782_v58 = vld [vmem:[%s1388_s7 + $0x28] sm:$0xff]  ;;  %v780_v61 = vld [vmem:[%s1388_s7 + $0x18] sm:$0xff]  ;;  %v1193_v13 = vmov 0.25  }
  0x1f   : > { %936 = vmatmul.msk.bf16.vlgmr.msra.gmra.mxu2 %vm401_vm0, %v447_v12  ;;  %648 = vmatpush.bf16.msrb.mxu1 %v1027_v42  ;;  %v781_v59 = vld [vmem:[%s1388_s7 + $0x20] sm:$0xff]  ;;  %v779_v62 = vld [vmem:[%s1388_s7 + $0x10] sm:$0xff]  ;;  %v778_v63 = vld [vmem:[%s1388_s7 + $0x8] sm:$0xff] }
  0x20   : > { %725 = vmatpush.bf16.msrb.mxu2 %v1035_v45  ;;  %v777_v0 = vld [vmem:[%s1388_s7] sm:$0xff] }
  0x21   : > { %v1080_v3 = vld [vmem:[#allocation7] ss:$0 sm:$0xff]  ;;  %v1081_v6 = vld [vmem:[%s1387_s6] ss:$0 sm:$0xff] }
  0x22   : > { %609 = vmatpush.bf16.msrb.mxu0 %v1030_v14  ;;  %v785_v15 = vld [vmem:[#allocation2] sm:$0x1] }
  0x23   : > { %649 = vmatpush.bf16.msrb.mxu1 %v1026_v43 }
  0x24   : > { %726 = vmatpush.bf16.msrb.mxu2 %v1034_v47 }
  0x26   : > { %610 = vmatpush.bf16.msrb.mxu0 %v1029_v29 }
  0x27   : > { %650 = vmatpush.bf16.msrb.mxu1 %v1025_v44 }
  0x28   : > { %727 = vmatpush.bf16.msrb.mxu2 %v1033_v48 }
  0x2a   : > { %611 = vmatpush.bf16.msrb.mxu0 %v1028_v30 }
  0x2b   : > { %651 = vmatpush.bf16.msrb.mxu1 %v1024_v46 }
  0x2c   : > { %728 = vmatpush.bf16.msrb.mxu2 %v1032_v49 }
  0x2e   : > { %797 = vmatpush.msra.mxu0 %v784_v56 }
  0x30   : > { %798 = vmatpush.msra.mxu0 %v783_v57 }
  0x32   : > { %799 = vmatpush.msra.mxu0 %v782_v58 }
  0x34   : > { %800 = vmatpush.msra.mxu0 %v781_v59 }
  0x36   : > { %801 = vmatpush.msra.mxu0 %v780_v61 }
  0x38   : > { %802 = vmatpush.msra.mxu0 %v779_v62 }
  0x3a   : > { %803 = vmatpush.msra.mxu0 %v778_v63 }
  0x3c   : > { %804 = vmatpush.msra.mxu0 %v777_v0 }
  0x9a   : > { %v414_v17 = vpop.f32.mrf.mxu0 }
  0x9b   : > { %v442_v18 = vpop.f32.mrf.mxu1 }
  0x9c   : > { %v443_v21 = vadd.f32 %v442_v18, %v414_v17 }
  0xa2   : > { %v477_v22 = vpop.f32.mrf.mxu2  ;;  %v416_v23 = vpop.f32.mrf.mxu0 }
  0xa3   : > { %v444_v24 = vpop.f32.mrf.mxu1  ;;  %v481_v25 = vadd.f32 %v477_v22, %v443_v21 }
  0xa5   : > { %509 = vmatpush.msra.mxu3 %v481_v25 }
  0xa6   : > { %938 = vmatmul.msk.f32.vlgmr.msra.gmra.mxu3 %vm490_vm2, %v937_v27 }
  0xaa   : > { %v479_v28 = vpop.f32.mrf.mxu2 }
 0x129   : > { %v511_v34 = vpop.f32.mrf.mxu3 }
 0x12a   : > { %v518_v35 = vmul.f32 %v1078_v31, %v511_v34 }
 0x12c   : > { %v523_v36 = vadd.f32 %v1079_v33, %v518_v35 }
 0x12e   : > { %v524_v37 = vmax.f32 %v523_v36, 0.0  ;;  %746 = vrot.lane.b32.xlu0 %v523_v36, %s1192_s12 }
 0x130   : > { %940 = vmatpush.msk.msrb.mxu3 %vm533_vm4, %v524_v37  ;;  %v566_v40 = vpack.c.bf16 %v524_v37, %v524_v37 }
 0x131   : > { %941 = vmatmul.msk.f32.vlgmr.msrb.gmra.mxu3 %vm529_vm5, %v939_v38 }
 0x132   : > { %985 = vmatpush.msk.msra.mxu3 %vm533_vm4, %v524_v37  ;;  %966 = vmatmul.msk.bf16.vlgmr.msrb.gmra.mxu0 %vm600_vm6, %v566_v40 }
 0x139   : > { %986 = vmatmul.msk.f32.vlgmr.msra.gmra.mxu3 %vm529_vm5, %v984_v41 }
 0x1a0   : > { %v747_v9 = vpop.permute.xlu0 %746 }
 0x1af   : > { %v613_v50 = vpop.f32.mrf.mxu0 }
 0x1b4   : > { %v554_v51 = vpop.f32.mrf.mxu3 }
 0x1b5   : > { %v557_v52 = vpack.c.bf16 %v554_v51, %v554_v51 }
 0x1b7   : > { %v615_v53 = vpop.f32.mrf.mxu0  ;;  %983 = vmatmul.msk.bf16.vlgmr.msrb.gmra.mxu1 %vm600_vm6, %v557_v52 }
 0x1bc   : > { %v681_v54 = vpop.f32.mrf.mxu3 }
 0x1bd   : > { %v684_v55 = vpack.c.bf16 %v681_v54, %v681_v54 }
 0x1bf   : > { %1011 = vmatmul.msk.bf16.vlgmr.msrb.gmra.mxu2 %vm600_vm6, %v684_v55 }
 0x234   : > { %v653_v60 = vpop.f32.mrf.mxu1 }
 0x235   : > { %v654_v2 = vadd.f32 %v653_v60, %v613_v50 }
 0x23c   : > { %v655_v1 = vpop.f32.mrf.mxu1 }
 0x242   : > { %v730_v4 = vpop.f32.mrf.mxu2 }
 0x243   : > { %v734_v5 = vadd.f32 %v730_v4, %v654_v2 }
 0x245   : > { %v739_v7 = vmul.f32 %v1080_v3, %v734_v5 }
 0x247   : > { %v744_v8 = vadd.f32 %v1081_v6, %v739_v7 }
 0x249   : > { %v749_v10 = vadd.f32 %v747_v9, %v744_v8 }
 0x24a   : > { %v732_v11 = vpop.f32.mrf.mxu2 }
 0x24b   : > { %v750_v12 = vmax.f32 %v749_v10, 0.0 }
 0x24d   : > { %1012 = vmatpush.msk.msrb.mxu3 %vm533_vm4, %v750_v12 }
 0x24e   : > { %1013 = vmatmul.msk.f32.vlgmr.msrb.gmra.mxu3 %vm529_vm5, %v1193_v13 }
 0x2d1   : > { %v774_v14 = vpop.f32.mrf.mxu3 }
 0x2d2   : > { %1014 = vmatmul.msk.f32.vlgmr.msra.gmra.mxu0 %vm600_vm6, %v774_v14 }
 0x34f   : > { %v806_v16 = vpop.f32.mrf.mxu0 }
 0x350   : > { %v807_v17 = vadd.f32 %v806_v16, %v785_v15 }
 0x352   : > { %810 = vst.msk [vmem:[%s374_s29] sm:$0x1] %vm809_vm8, %v807_v17 }
 0x353 PF: > { %s23_s11 = sadd.s32 1, %s1186_s11  }
 0x354   : > { %p20_p7 = scmp.ge.s32.totalorder %s23_s11, 4  }
 0x356   :  { %22 = sbr.rel (!%p20_p7) target bundleno = 5 (0x5), region = 103 }
 0x35b   :  { %828 = vsyncpa [#allocation4], 1 }
 0x35c   :  { %830 = vsyncpa [#allocation4 + $0x1], 1 }
 0x35d   :  { %831 = vsyncpa [#allocation6], 1 }

</bundles_post_ra>
